<compile_context>
chip_gen: v7x
topology: tpu7x:2x2x1
jax: 0.10.0
libtpu: 0.0.40
codegen_flags: <defaults>
</compile_context>

<pallas_src>
import jax
import jax.numpy as jnp
import numpy as np
from jax.experimental import pallas as pl
from jax.experimental.pallas import tpu as pltpu

LAYER_SEQUENCE = ("conv1", "relu1", "pool1", "conv2", "relu2", "pool2", "fc1", "fc2")


def _conv_band_matrix(w_hwio, out_w):
    """(3,3,Ci,Co) HWIO conv weights -> per-kh banded matrix (3, (out_w+2)*Ci, out_w*Co).

    Row kh, (wp*Ci + ci), col (w*Co + co) holds W[kh, kw=wp-w, ci, co] (zero
    outside the 3-tap band).  dot(padded-row-slab, band[kh]) — where the slab has
    rows (n, h) and lanes (wp, ci) — therefore yields tap kh's contribution to the
    conv output laid out lane-dense as rows (n, h), lanes (w, co): im2col is
    folded into the weights and needs no in-kernel assembly stores."""
    _, _, ci, co = w_hwio.shape
    w_np = np.asarray(w_hwio, np.float32)
    wp_w = out_w + 2
    band = np.zeros((3, wp_w * ci, out_w * co), np.float32)
    for kh in range(3):
        for kw in range(3):
            blk = w_np[kh, kw]                                   # (Ci, Co)
            for w in range(out_w):
                wp = w + kw                                      # padded-row position
                band[kh, wp * ci:(wp + 1) * ci, w * co:(w + 1) * co] = blk
    return band


def _build_fused_forward(params, extracted_layers, x_shape):
    """Build a jitted fn(x_nhwc) -> [extracted activations] backed by one pallas_call."""
    N, H1, W1, C0 = x_shape
    C1 = params["conv1_w"].shape[-1]
    C2 = params["conv2_w"].shape[-1]
    H2, W2 = H1 // 2, W1 // 2
    H3, W3 = H2 // 2, W2 // 2
    D1 = params["fc1_w"].shape[-1]
    D2 = params["fc2_w"].shape[-1]

    # Lane-dense kernel layout: rows = (n, h), lanes = (w, c).  conv/relu slabs
    # are exactly 128 lanes wide, so their HBM write-backs are unmasked stores.
    kernel_shape = {
        "conv1": (N * H1, W1 * C1), "relu1": (N * H1, W1 * C1),
        "pool1": (N * H2, W2 * C1),
        "conv2": (N * H2, W2 * C2), "relu2": (N * H2, W2 * C2),
        "pool2": (N * H3, W3 * C2),
        "fc1": (N, D1), "fc2": (N, D2),
    }
    public_shape = {
        "conv1": (N, H1, W1, C1), "relu1": (N, H1, W1, C1),
        "pool1": (N, H2, W2, C1),
        "conv2": (N, H2, W2, C2), "relu2": (N, H2, W2, C2),
        "pool2": (N, H3, W3, C2),
        "fc1": (N, D1), "fc2": (N, D2),
    }

    extracted = [nm for nm in LAYER_SEQUENCE if nm in extracted_layers]
    # The torch module always runs every child module; keep the final layer as a
    # kernel output (discarded if not extracted) so the full forward is computed.
    out_names = extracted if "fc2" in extracted else extracted + ["fc2"]
    n_out = len(out_names)

    # ---- one-time host-side weight re-layout (zero runtime cost) ------------
    # Conv weights as bf16 banded matrices; biases pre-tiled to the (w, c) lane
    # layout; fc1 rows permuted from torch NCHW-flatten order (c,h,w) to NHWC
    # order (h,w,c) so the runtime flatten is a pure relabeling of pool2.
    b1_band = jnp.asarray(_conv_band_matrix(params["conv1_w"], W1), jnp.bfloat16)
    b2_band = jnp.asarray(_conv_band_matrix(params["conv2_w"], W2), jnp.bfloat16)
    cb1 = jnp.asarray(np.tile(np.asarray(params["conv1_b"], np.float32), W1)
                      .reshape(1, W1 * C1))
    cb2 = jnp.asarray(np.tile(np.asarray(params["conv2_b"], np.float32), W2)
                      .reshape(1, W2 * C2))
    fc1_w = jnp.asarray(np.asarray(params["fc1_w"], np.float32)
                        .reshape(C2, H3, W3, D1).transpose(1, 2, 0, 3)
                        .reshape(H3 * W3 * C2, D1), jnp.bfloat16)
    fc1_b = jnp.asarray(np.asarray(params["fc1_b"], np.float32).reshape(1, D1))
    fc2_w = jnp.asarray(params["fc2_w"], jnp.bfloat16)
    fc2_b = jnp.asarray(np.asarray(params["fc2_b"], np.float32).reshape(1, D2))

    def kernel(x_ref, b1_ref, cb1_ref, b2_ref, cb2_ref,
               fc1w_ref, fc1b_ref, fc2w_ref, fc2b_ref, *rest):
        out_refs = dict(zip(out_names, rest[:n_out]))
        pad1_ref, pad2_ref = rest[n_out:]

        def emit(name, value):
            # Static Python check: only the extracted layers are written to HBM.
            if name in out_refs:
                out_refs[name][...] = value.astype(out_refs[name].dtype)

        def conv3x3_same(pad_ref, band_ref, cbias_ref, value, h, w, cin, cout):
            """3x3 'same' conv (+bias) over the whole batch.

            pad_ref: (N, h+2, (w+2)*cin) VMEM scratch holding the zero-padded
            image with (w, cin) fused into the lane axis.  Three MXU matmuls
            (one per kh tap) of sublane slabs of pad_ref against the banded
            weight matrix produce the lane-dense (N*h, w*cout) output; no
            im2col assembly stores at all."""
            wp = w + 2
            # Ring-only halo zeroing: top/bottom rows + 1-pixel left/right strips.
            z_row = jnp.zeros((N, 1, wp * cin), jnp.float32)
            z_col = jnp.zeros((N, h + 2, cin), jnp.float32)
            pad_ref[:, 0:1, :] = z_row
            pad_ref[:, h + 1:h + 2, :] = z_row
            pad_ref[:, :, 0:cin] = z_col
            pad_ref[:, :, (w + 1) * cin:wp * cin] = z_col
            # Interior: one lane-dense (w*cin)-wide store of the activation.
            pad_ref[:, 1:h + 1, cin:(w + 1) * cin] = value
            # 3 matmuls, K=(w+2)*cin, N=w*cout, bf16 operands, f32 accumulation.
            acc = cbias_ref[...]                       # (1, w*cout) f32, broadcast
            for kh in range(3):
                a = (pad_ref[:, kh:kh + h, :]
                     .reshape(N * h, wp * cin).astype(jnp.bfloat16))
                acc = acc + jnp.dot(a, band_ref[kh],
                                    preferred_element_type=jnp.float32)
            return acc                                  # (N*h, w*cout) f32

        def maxpool2x2(v2d, h, w, c):
            """2x2 / stride-2 maxpool on the (N*h, w*c) lane-dense layout."""
            # pool over h: leading-dim split only (lane dim untouched), then max.
            u = jnp.max(v2d.reshape(N * h // 2, 2, w * c), axis=1)
            # pool over w: pairwise max of adjacent c-wide lane blocks + lane concat.
            pieces = [jnp.maximum(u[:, (2 * i) * c:(2 * i + 1) * c],
                                  u[:, (2 * i + 1) * c:(2 * i + 2) * c])
                      for i in range(w // 2)]
            return jnp.concatenate(pieces, axis=-1)     # (N*h/2, (w/2)*c)

        # conv1 -> relu1 -> pool1 (ReLU / pool are fused epilogues, all in VMEM)
        y1 = conv3x3_same(pad1_ref, b1_ref, cb1_ref, x_ref[...], H1, W1, C0, C1)
        emit("conv1", y1)
        r1 = jnp.maximum(y1, 0.0)
        emit("relu1", r1)
        p1 = maxpool2x2(r1, H1, W1, C1)
        emit("pool1", p1)

        # conv2 -> relu2 -> pool2
        y2 = conv3x3_same(pad2_ref, b2_ref, cb2_ref,
                          p1.reshape(N, H2, W2 * C1), H2, W2, C1, C2)
        emit("conv2", y2)
        r2 = jnp.maximum(y2, 0.0)
        emit("relu2", r2)
        p2 = maxpool2x2(r2, H2, W2, C2)
        emit("pool2", p2)

        # Flatten before the fc layers: lane-concat pool2's H3 row-slabs per
        # image -> (N, H3*W3*C2) in NHWC order (the NCHW .view() permutation is
        # folded into fc1's weights).  No scratch, no store loop.
        rows = p2.reshape(N, H3, W3 * C2)
        flat = jnp.concatenate([rows[:, i, :] for i in range(H3)], axis=-1)
        f1 = (jnp.dot(flat.astype(jnp.bfloat16), fc1w_ref[...],
                      preferred_element_type=jnp.float32) + fc1b_ref[...])
        emit("fc1", f1)
        f2 = (jnp.dot(f1.astype(jnp.bfloat16), fc2w_ref[...],
                      preferred_element_type=jnp.float32) + fc2b_ref[...])
        emit("fc2", f2)

    out_shapes = tuple(jax.ShapeDtypeStruct(kernel_shape[nm], jnp.float32)
                       for nm in out_names)
    fused = pl.pallas_call(
        kernel,
        out_shape=out_shapes,
        # No grid: a single invocation handles the whole batch; weights,
        # activations and scratch total well under 1 MiB of VMEM.
        scratch_shapes=[
            pltpu.VMEM((N, H1 + 2, (W1 + 2) * C0), jnp.float32),   # conv1 padded rows
            pltpu.VMEM((N, H2 + 2, (W2 + 2) * C1), jnp.float32),   # conv2 padded rows
        ],
    )
    # TODO(synk): if the batch grows, add a leading 'parallel' batch grid axis
    # (megacore on v7x) and re-derive the pad scratch against the 64 MiB VMEM.

    def forward(x_nhwc):
        # Fuse (w, c) into the lane axis once at the boundary (free reshape).
        x2d = x_nhwc.reshape(N, H1, W1 * C0)
        raw = fused(x2d, b1_band, cb1, b2_band, cb2, fc1_w, fc1_b, fc2_w, fc2_b)
        if not isinstance(raw, (tuple, list)):
            raw = (raw,)
        named = dict(zip(out_names, raw))
        # (N*H, W*C) -> NHWC / (N, D) is a zero-copy row-major reinterpretation.
        return [named[nm].reshape(public_shape[nm]) for nm in extracted]

    return jax.jit(forward)


class FeatureExtractor:
    """JAX/Pallas analogue of the PyTorch FeatureExtractor.

    Runs every child layer of the (synthetic) submodule in order, flattens the
    activation before the 'fc' layers, and returns the outputs of
    `extracted_layers` in encounter order — with the whole submodule forward
    fused into a single Pallas TPU kernel."""

    def __init__(self, params, extracted_layers):
        self.params = params
        self.extracted_layers = list(extracted_layers)
        self._compiled = {}

    def __call__(self, x_nhwc):
        key = tuple(x_nhwc.shape)
        if key not in self._compiled:
            self._compiled[key] = _build_fused_forward(
                self.params, self.extracted_layers, x_nhwc.shape)
        return self._compiled[key](x_nhwc)


def build_params(key):
    """Deterministic parameters for the synthetic submodule
    (conv 4->8, conv 8->16, fc 256->32, fc 32->10; same keys/shapes as before)."""
    k = jax.random.split(key, 8)
    scale = 0.1
    return {
        "conv1_w": scale * jax.random.normal(k[0], (3, 3, 4, 8), jnp.float32),
        "conv1_b": scale * jax.random.normal(k[1], (8,), jnp.float32),
        "conv2_w": scale * jax.random.normal(k[2], (3, 3, 8, 16), jnp.float32),
        "conv2_b": scale * jax.random.normal(k[3], (16,), jnp.float32),
        # rows indexed by the torch NCHW flatten order (c, h, w)
        "fc1_w": scale * jax.random.normal(k[4], (16 * 4 * 4, 32), jnp.float32),
        "fc1_b": scale * jax.random.normal(k[5], (32,), jnp.float32),
        "fc2_w": scale * jax.random.normal(k[6], (32, 10), jnp.float32),
        "fc2_b": scale * jax.random.normal(k[7], (10,), jnp.float32),
    }


if __name__ == "__main__":
    key = jax.random.PRNGKey(0)
    kx, kp = jax.random.split(key)

    # Input in PyTorch NCHW convention: (batch=2, channels=4, 16, 16)
    x_nchw = jax.random.normal(kx, (2, 4, 16, 16), jnp.float32)
    # layout: convert NCHW -> NHWC once at the boundary for the TPU kernel
    x_nhwc = jnp.transpose(x_nchw, (0, 2, 3, 1))

    params = build_params(kp)
    extractor = FeatureExtractor(params, extracted_layers=["conv2", "fc1"])

    outs = extractor(x_nhwc)
    for o in outs:
        jax.block_until_ready(o)

    assert outs[0].shape == (2, 8, 8, 16)   # conv2 output (NHWC)
    assert outs[1].shape == (2, 32)         # fc1 output
    assert all(bool(jnp.all(jnp.isfinite(o))) for o in outs)
    print("KERNEL_OK")
</pallas_src>

<mosaic_0001>
module attributes {stable_mosaic.version = 11 : i64} {
  func.func @kernel(%arg0: memref<2x16x64xf32, #tpu.memory_space<vmem>>, %arg1: memref<3x72x128xbf16, #tpu.memory_space<vmem>>, %arg2: memref<1x128xf32, #tpu.memory_space<vmem>>, %arg3: memref<3x80x128xbf16, #tpu.memory_space<vmem>>, %arg4: memref<1x128xf32, #tpu.memory_space<vmem>>, %arg5: memref<256x32xbf16, #tpu.memory_space<vmem>>, %arg6: memref<1x32xf32, #tpu.memory_space<vmem>>, %arg7: memref<32x10xbf16, #tpu.memory_space<vmem>>, %arg8: memref<1x10xf32, #tpu.memory_space<vmem>>, %arg9: memref<16x128xf32, #tpu.memory_space<vmem>>, %arg10: memref<2x32xf32, #tpu.memory_space<vmem>>, %arg11: memref<2x10xf32, #tpu.memory_space<vmem>>, %arg12: memref<2x18x72xf32, #tpu.memory_space<vmem>>, %arg13: memref<2x10x80xf32, #tpu.memory_space<vmem>>) attributes {dimension_semantics = [], scalar_prefetch = 0 : i64, scratch_operands = 2 : i64, tpu.core_type = #tpu.core_type<tc>} {
    %c0 = arith.constant 0 : index
    %c0_0 = arith.constant 0 : index
    %c0_1 = arith.constant 0 : index
    %0 = vector.load %arg0[%c0, %c0_0, %c0_1] : memref<2x16x64xf32, #tpu.memory_space<vmem>>, vector<2x16x64xf32>
    %cst = arith.constant 0.000000e+00 : f32
    %1 = vector.broadcast %cst : f32 to vector<2x1x72xf32>
    %cst_2 = arith.constant 0.000000e+00 : f32
    %2 = vector.broadcast %cst_2 : f32 to vector<2x18x4xf32>
    %c0_3 = arith.constant 0 : index
    %c0_4 = arith.constant 0 : index
    %c0_5 = arith.constant 0 : index
    %3 = vector.load %arg12[%c0_3, %c0_4, %c0_5] : memref<2x18x72xf32, #tpu.memory_space<vmem>>, vector<2x1x72xf32>
    tpu.vector_store %arg12[%c0_3, %c0_4, %c0_5], %1 {strides = array<i32>} : memref<2x18x72xf32, #tpu.memory_space<vmem>>, vector<2x1x72xf32>,
    %c0_6 = arith.constant 0 : index
    %c17 = arith.constant 17 : index
    %c0_7 = arith.constant 0 : index
    %4 = vector.load %arg12[%c0_6, %c17, %c0_7] : memref<2x18x72xf32, #tpu.memory_space<vmem>>, vector<2x1x72xf32>
    tpu.vector_store %arg12[%c0_6, %c17, %c0_7], %1 {strides = array<i32>} : memref<2x18x72xf32, #tpu.memory_space<vmem>>, vector<2x1x72xf32>,
    %c0_8 = arith.constant 0 : index
    %c0_9 = arith.constant 0 : index
    %c0_10 = arith.constant 0 : index
    %5 = vector.load %arg12[%c0_8, %c0_9, %c0_10] : memref<2x18x72xf32, #tpu.memory_space<vmem>>, vector<2x18x4xf32>
    tpu.vector_store %arg12[%c0_8, %c0_9, %c0_10], %2 {strides = array<i32>} : memref<2x18x72xf32, #tpu.memory_space<vmem>>, vector<2x18x4xf32>,
    %c0_11 = arith.constant 0 : index
    %c0_12 = arith.constant 0 : index
    %c68 = arith.constant 68 : index
    %6 = vector.load %arg12[%c0_11, %c0_12, %c68] : memref<2x18x72xf32, #tpu.memory_space<vmem>>, vector<2x18x4xf32>
    tpu.vector_store %arg12[%c0_11, %c0_12, %c68], %2 {strides = array<i32>} : memref<2x18x72xf32, #tpu.memory_space<vmem>>, vector<2x18x4xf32>,
    %c0_13 = arith.constant 0 : index
    %c1 = arith.constant 1 : index
    %c4 = arith.constant 4 : index
    %7 = vector.load %arg12[%c0_13, %c1, %c4] : memref<2x18x72xf32, #tpu.memory_space<vmem>>, vector<2x16x64xf32>
    tpu.vector_store %arg12[%c0_13, %c1, %c4], %0 {strides = array<i32>} : memref<2x18x72xf32, #tpu.memory_space<vmem>>, vector<2x16x64xf32>,
    %c0_14 = arith.constant 0 : index
    %c0_15 = arith.constant 0 : index
    %8 = vector.load %arg2[%c0_14, %c0_15] : memref<1x128xf32, #tpu.memory_space<vmem>>, vector<1x128xf32>
    %c0_16 = arith.constant 0 : index
    %c0_17 = arith.constant 0 : index
    %c0_18 = arith.constant 0 : index
    %9 = vector.load %arg12[%c0_16, %c0_17, %c0_18] : memref<2x18x72xf32, #tpu.memory_space<vmem>>, vector<2x16x72xf32>
    %10 = vector.shape_cast %9 : vector<2x16x72xf32> to vector<32x72xf32>
    %11 = arith.truncf %10 : vector<32x72xf32> to vector<32x72xbf16>
    %c0_19 = arith.constant 0 : index
    %c0_20 = arith.constant 0 : index
    %c0_21 = arith.constant 0 : index
    %12 = vector.load %arg1[%c0_19, %c0_20, %c0_21] : memref<3x72x128xbf16, #tpu.memory_space<vmem>>, vector<1x72x128xbf16>
    %13 = vector.shape_cast %12 : vector<1x72x128xbf16> to vector<72x128xbf16>
    %cst_22 = arith.constant dense<0.000000e+00> : vector<32x128xf32>
    %14 = tpu.matmul %11, %13, %cst_22 {dimension_numbers = #tpu.dot_dimension_numbers<[1], [0], [0], [1], [0, 0, 1, 1], [], []>} : vector<32x72xbf16>, vector<72x128xbf16>, vector<32x128xf32> -> vector<32x128xf32>
    %15 = vector.broadcast %8 : vector<1x128xf32> to vector<32x128xf32>
    %16 = arith.addf %15, %14 : vector<32x128xf32>
    %c0_23 = arith.constant 0 : index
    %c1_24 = arith.constant 1 : index
    %c0_25 = arith.constant 0 : index
    %17 = vector.load %arg12[%c0_23, %c1_24, %c0_25] : memref<2x18x72xf32, #tpu.memory_space<vmem>>, vector<2x16x72xf32>
    %18 = vector.shape_cast %17 : vector<2x16x72xf32> to vector<32x72xf32>
    %19 = arith.truncf %18 : vector<32x72xf32> to vector<32x72xbf16>
    %c1_26 = arith.constant 1 : index
    %c0_27 = arith.constant 0 : index
    %c0_28 = arith.constant 0 : index
    %20 = vector.load %arg1[%c1_26, %c0_27, %c0_28] : memref<3x72x128xbf16, #tpu.memory_space<vmem>>, vector<1x72x128xbf16>
    %21 = vector.shape_cast %20 : vector<1x72x128xbf16> to vector<72x128xbf16>
    %cst_29 = arith.constant dense<0.000000e+00> : vector<32x128xf32>
    %22 = tpu.matmul %19, %21, %cst_29 {dimension_numbers = #tpu.dot_dimension_numbers<[1], [0], [0], [1], [0, 0, 1, 1], [], []>} : vector<32x72xbf16>, vector<72x128xbf16>, vector<32x128xf32> -> vector<32x128xf32>
    %23 = arith.addf %16, %22 : vector<32x128xf32>
    %c0_30 = arith.constant 0 : index
    %c2 = arith.constant 2 : index
    %c0_31 = arith.constant 0 : index
    %24 = vector.load %arg12[%c0_30, %c2, %c0_31] : memref<2x18x72xf32, #tpu.memory_space<vmem>>, vector<2x16x72xf32>
    %25 = vector.shape_cast %24 : vector<2x16x72xf32> to vector<32x72xf32>
    %26 = arith.truncf %25 : vector<32x72xf32> to vector<32x72xbf16>
    %c2_32 = arith.constant 2 : index
    %c0_33 = arith.constant 0 : index
    %c0_34 = arith.constant 0 : index
    %27 = vector.load %arg1[%c2_32, %c0_33, %c0_34] : memref<3x72x128xbf16, #tpu.memory_space<vmem>>, vector<1x72x128xbf16>
    %28 = vector.shape_cast %27 : vector<1x72x128xbf16> to vector<72x128xbf16>
    %cst_35 = arith.constant dense<0.000000e+00> : vector<32x128xf32>
    %29 = tpu.matmul %26, %28, %cst_35 {dimension_numbers = #tpu.dot_dimension_numbers<[1], [0], [0], [1], [0, 0, 1, 1], [], []>} : vector<32x72xbf16>, vector<72x128xbf16>, vector<32x128xf32> -> vector<32x128xf32>
    %30 = arith.addf %23, %29 : vector<32x128xf32>
    %cst_36 = arith.constant 0.000000e+00 : f32
    %31 = vector.broadcast %cst_36 : f32 to vector<32x128xf32>
    %32 = arith.maximumf %30, %31 : vector<32x128xf32>
    %33 = vector.shape_cast %32 : vector<32x128xf32> to vector<16x2x128xf32>
    %cst_37 = arith.constant dense<0xFF800000> : vector<16x128xf32>
    %34 = vector.multi_reduction <maximumf>, %33, %cst_37 [1] : vector<16x2x128xf32> to vector<16x128xf32>
    %35 = vector.extract_strided_slice %34 {offsets = [0, 0], sizes = [16, 8], strides = [1, 1]} : vector<16x128xf32> to vector<16x8xf32>
    %36 = vector.extract_strided_slice %34 {offsets = [0, 8], sizes = [16, 8], strides = [1, 1]} : vector<16x128xf32> to vector<16x8xf32>
    %37 = arith.maximumf %35, %36 : vector<16x8xf32>
    %38 = vector.extract_strided_slice %34 {offsets = [0, 16], sizes = [16, 8], strides = [1, 1]} : vector<16x128xf32> to vector<16x8xf32>
    %39 = vector.extract_strided_slice %34 {offsets = [0, 24], sizes = [16, 8], strides = [1, 1]} : vector<16x128xf32> to vector<16x8xf32>
    %40 = arith.maximumf %38, %39 : vector<16x8xf32>
    %41 = vector.extract_strided_slice %34 {offsets = [0, 32], sizes = [16, 8], strides = [1, 1]} : vector<16x128xf32> to vector<16x8xf32>
    %42 = vector.extract_strided_slice %34 {offsets = [0, 40], sizes = [16, 8], strides = [1, 1]} : vector<16x128xf32> to vector<16x8xf32>
    %43 = arith.maximumf %41, %42 : vector<16x8xf32>
    %44 = vector.extract_strided_slice %34 {offsets = [0, 48], sizes = [16, 8], strides = [1, 1]} : vector<16x128xf32> to vector<16x8xf32>
    %45 = vector.extract_strided_slice %34 {offsets = [0, 56], sizes = [16, 8], strides = [1, 1]} : vector<16x128xf32> to vector<16x8xf32>
    %46 = arith.maximumf %44, %45 : vector<16x8xf32>
    %47 = vector.extract_strided_slice %34 {offsets = [0, 64], sizes = [16, 8], strides = [1, 1]} : vector<16x128xf32> to vector<16x8xf32>
    %48 = vector.extract_strided_slice %34 {offsets = [0, 72], sizes = [16, 8], strides = [1, 1]} : vector<16x128xf32> to vector<16x8xf32>
    %49 = arith.maximumf %47, %48 : vector<16x8xf32>
    %50 = vector.extract_strided_slice %34 {offsets = [0, 80], sizes = [16, 8], strides = [1, 1]} : vector<16x128xf32> to vector<16x8xf32>
    %51 = vector.extract_strided_slice %34 {offsets = [0, 88], sizes = [16, 8], strides = [1, 1]} : vector<16x128xf32> to vector<16x8xf32>
    %52 = arith.maximumf %50, %51 : vector<16x8xf32>
    %53 = vector.extract_strided_slice %34 {offsets = [0, 96], sizes = [16, 8], strides = [1, 1]} : vector<16x128xf32> to vector<16x8xf32>
    %54 = vector.extract_strided_slice %34 {offsets = [0, 104], sizes = [16, 8], strides = [1, 1]} : vector<16x128xf32> to vector<16x8xf32>
    %55 = arith.maximumf %53, %54 : vector<16x8xf32>
    %56 = vector.extract_strided_slice %34 {offsets = [0, 112], sizes = [16, 8], strides = [1, 1]} : vector<16x128xf32> to vector<16x8xf32>
    %57 = vector.extract_strided_slice %34 {offsets = [0, 120], sizes = [16, 8], strides = [1, 1]} : vector<16x128xf32> to vector<16x8xf32>
    %58 = arith.maximumf %56, %57 : vector<16x8xf32>
    %59 = tpu.concatenate %37, %40, %43, %46, %49, %52, %55, %58 in 1 : vector<16x8xf32>, vector<16x8xf32>, vector<16x8xf32>, vector<16x8xf32>, vector<16x8xf32>, vector<16x8xf32>, vector<16x8xf32>, vector<16x8xf32> -> vector<16x64xf32>
    %60 = vector.shape_cast %59 : vector<16x64xf32> to vector<2x8x64xf32>
    %cst_38 = arith.constant 0.000000e+00 : f32
    %61 = vector.broadcast %cst_38 : f32 to vector<2x1x80xf32>
    %cst_39 = arith.constant 0.000000e+00 : f32
    %62 = vector.broadcast %cst_39 : f32 to vector<2x10x8xf32>
    %c0_40 = arith.constant 0 : index
    %c0_41 = arith.constant 0 : index
    %c0_42 = arith.constant 0 : index
    %63 = vector.load %arg13[%c0_40, %c0_41, %c0_42] : memref<2x10x80xf32, #tpu.memory_space<vmem>>, vector<2x1x80xf32>
    tpu.vector_store %arg13[%c0_40, %c0_41, %c0_42], %61 {strides = array<i32>} : memref<2x10x80xf32, #tpu.memory_space<vmem>>, vector<2x1x80xf32>,
    %c0_43 = arith.constant 0 : index
    %c9 = arith.constant 9 : index
    %c0_44 = arith.constant 0 : index
    %64 = vector.load %arg13[%c0_43, %c9, %c0_44] : memref<2x10x80xf32, #tpu.memory_space<vmem>>, vector<2x1x80xf32>
    tpu.vector_store %arg13[%c0_43, %c9, %c0_44], %61 {strides = array<i32>} : memref<2x10x80xf32, #tpu.memory_space<vmem>>, vector<2x1x80xf32>,
    %c0_45 = arith.constant 0 : index
    %c0_46 = arith.constant 0 : index
    %c0_47 = arith.constant 0 : index
    %65 = vector.load %arg13[%c0_45, %c0_46, %c0_47] : memref<2x10x80xf32, #tpu.memory_space<vmem>>, vector<2x10x8xf32>
    tpu.vector_store %arg13[%c0_45, %c0_46, %c0_47], %62 {strides = array<i32>} : memref<2x10x80xf32, #tpu.memory_space<vmem>>, vector<2x10x8xf32>,
    %c0_48 = arith.constant 0 : index
    %c0_49 = arith.constant 0 : index
    %c72 = arith.constant 72 : index
    %66 = vector.load %arg13[%c0_48, %c0_49, %c72] : memref<2x10x80xf32, #tpu.memory_space<vmem>>, vector<2x10x8xf32>
    tpu.vector_store %arg13[%c0_48, %c0_49, %c72], %62 {strides = array<i32>} : memref<2x10x80xf32, #tpu.memory_space<vmem>>, vector<2x10x8xf32>,
    %c0_50 = arith.constant 0 : index
    %c1_51 = arith.constant 1 : index
    %c8 = arith.constant 8 : index
    %67 = vector.load %arg13[%c0_50, %c1_51, %c8] : memref<2x10x80xf32, #tpu.memory_space<vmem>>, vector<2x8x64xf32>
    tpu.vector_store %arg13[%c0_50, %c1_51, %c8], %60 {strides = array<i32>} : memref<2x10x80xf32, #tpu.memory_space<vmem>>, vector<2x8x64xf32>,
    %c0_52 = arith.constant 0 : index
    %c0_53 = arith.constant 0 : index
    %68 = vector.load %arg4[%c0_52, %c0_53] : memref<1x128xf32, #tpu.memory_space<vmem>>, vector<1x128xf32>
    %c0_54 = arith.constant 0 : index
    %c0_55 = arith.constant 0 : index
    %c0_56 = arith.constant 0 : index
    %69 = vector.load %arg13[%c0_54, %c0_55, %c0_56] : memref<2x10x80xf32, #tpu.memory_space<vmem>>, vector<2x8x80xf32>
    %70 = vector.shape_cast %69 : vector<2x8x80xf32> to vector<16x80xf32>
    %71 = arith.truncf %70 : vector<16x80xf32> to vector<16x80xbf16>
    %c0_57 = arith.constant 0 : index
    %c0_58 = arith.constant 0 : index
    %c0_59 = arith.constant 0 : index
    %72 = vector.load %arg3[%c0_57, %c0_58, %c0_59] : memref<3x80x128xbf16, #tpu.memory_space<vmem>>, vector<1x80x128xbf16>
    %73 = vector.shape_cast %72 : vector<1x80x128xbf16> to vector<80x128xbf16>
    %cst_60 = arith.constant dense<0.000000e+00> : vector<16x128xf32>
    %74 = tpu.matmul %71, %73, %cst_60 {dimension_numbers = #tpu.dot_dimension_numbers<[1], [0], [0], [1], [0, 0, 1, 1], [], []>} : vector<16x80xbf16>, vector<80x128xbf16>, vector<16x128xf32> -> vector<16x128xf32>
    %75 = vector.broadcast %68 : vector<1x128xf32> to vector<16x128xf32>
    %76 = arith.addf %75, %74 : vector<16x128xf32>
    %c0_61 = arith.constant 0 : index
    %c1_62 = arith.constant 1 : index
    %c0_63 = arith.constant 0 : index
    %77 = vector.load %arg13[%c0_61, %c1_62, %c0_63] : memref<2x10x80xf32, #tpu.memory_space<vmem>>, vector<2x8x80xf32>
    %78 = vector.shape_cast %77 : vector<2x8x80xf32> to vector<16x80xf32>
    %79 = arith.truncf %78 : vector<16x80xf32> to vector<16x80xbf16>
    %c1_64 = arith.constant 1 : index
    %c0_65 = arith.constant 0 : index
    %c0_66 = arith.constant 0 : index
    %80 = vector.load %arg3[%c1_64, %c0_65, %c0_66] : memref<3x80x128xbf16, #tpu.memory_space<vmem>>, vector<1x80x128xbf16>
    %81 = vector.shape_cast %80 : vector<1x80x128xbf16> to vector<80x128xbf16>
    %cst_67 = arith.constant dense<0.000000e+00> : vector<16x128xf32>
    %82 = tpu.matmul %79, %81, %cst_67 {dimension_numbers = #tpu.dot_dimension_numbers<[1], [0], [0], [1], [0, 0, 1, 1], [], []>} : vector<16x80xbf16>, vector<80x128xbf16>, vector<16x128xf32> -> vector<16x128xf32>
    %83 = arith.addf %76, %82 : vector<16x128xf32>
    %c0_68 = arith.constant 0 : index
    %c2_69 = arith.constant 2 : index
    %c0_70 = arith.constant 0 : index
    %84 = vector.load %arg13[%c0_68, %c2_69, %c0_70] : memref<2x10x80xf32, #tpu.memory_space<vmem>>, vector<2x8x80xf32>
    %85 = vector.shape_cast %84 : vector<2x8x80xf32> to vector<16x80xf32>
    %86 = arith.truncf %85 : vector<16x80xf32> to vector<16x80xbf16>
    %c2_71 = arith.constant 2 : index
    %c0_72 = arith.constant 0 : index
    %c0_73 = arith.constant 0 : index
    %87 = vector.load %arg3[%c2_71, %c0_72, %c0_73] : memref<3x80x128xbf16, #tpu.memory_space<vmem>>, vector<1x80x128xbf16>
    %88 = vector.shape_cast %87 : vector<1x80x128xbf16> to vector<80x128xbf16>
    %cst_74 = arith.constant dense<0.000000e+00> : vector<16x128xf32>
    %89 = tpu.matmul %86, %88, %cst_74 {dimension_numbers = #tpu.dot_dimension_numbers<[1], [0], [0], [1], [0, 0, 1, 1], [], []>} : vector<16x80xbf16>, vector<80x128xbf16>, vector<16x128xf32> -> vector<16x128xf32>
    %90 = arith.addf %83, %89 : vector<16x128xf32>
    %c0_75 = arith.constant 0 : index
    %c0_76 = arith.constant 0 : index
    %91 = vector.load %arg9[%c0_75, %c0_76] : memref<16x128xf32, #tpu.memory_space<vmem>>, vector<16x128xf32>
    tpu.vector_store %arg9[%c0_75, %c0_76], %90 {strides = array<i32>} : memref<16x128xf32, #tpu.memory_space<vmem>>, vector<16x128xf32>,
    %cst_77 = arith.constant 0.000000e+00 : f32
    %92 = vector.broadcast %cst_77 : f32 to vector<16x128xf32>
    %93 = arith.maximumf %90, %92 : vector<16x128xf32>
    %94 = vector.shape_cast %93 : vector<16x128xf32> to vector<8x2x128xf32>
    %cst_78 = arith.constant dense<0xFF800000> : vector<8x128xf32>
    %95 = vector.multi_reduction <maximumf>, %94, %cst_78 [1] : vector<8x2x128xf32> to vector<8x128xf32>
    %96 = vector.extract_strided_slice %95 {offsets = [0, 0], sizes = [8, 16], strides = [1, 1]} : vector<8x128xf32> to vector<8x16xf32>
    %97 = vector.extract_strided_slice %95 {offsets = [0, 16], sizes = [8, 16], strides = [1, 1]} : vector<8x128xf32> to vector<8x16xf32>
    %98 = arith.maximumf %96, %97 : vector<8x16xf32>
    %99 = vector.extract_strided_slice %95 {offsets = [0, 32], sizes = [8, 16], strides = [1, 1]} : vector<8x128xf32> to vector<8x16xf32>
    %100 = vector.extract_strided_slice %95 {offsets = [0, 48], sizes = [8, 16], strides = [1, 1]} : vector<8x128xf32> to vector<8x16xf32>
    %101 = arith.maximumf %99, %100 : vector<8x16xf32>
    %102 = vector.extract_strided_slice %95 {offsets = [0, 64], sizes = [8, 16], strides = [1, 1]} : vector<8x128xf32> to vector<8x16xf32>
    %103 = vector.extract_strided_slice %95 {offsets = [0, 80], sizes = [8, 16], strides = [1, 1]} : vector<8x128xf32> to vector<8x16xf32>
    %104 = arith.maximumf %102, %103 : vector<8x16xf32>
    %105 = vector.extract_strided_slice %95 {offsets = [0, 96], sizes = [8, 16], strides = [1, 1]} : vector<8x128xf32> to vector<8x16xf32>
    %106 = vector.extract_strided_slice %95 {offsets = [0, 112], sizes = [8, 16], strides = [1, 1]} : vector<8x128xf32> to vector<8x16xf32>
    %107 = arith.maximumf %105, %106 : vector<8x16xf32>
    %108 = tpu.concatenate %98, %101, %104, %107 in 1 : vector<8x16xf32>, vector<8x16xf32>, vector<8x16xf32>, vector<8x16xf32> -> vector<8x64xf32>
    %109 = vector.shape_cast %108 : vector<8x64xf32> to vector<2x4x64xf32>
    %110 = vector.extract_strided_slice %109 {offsets = [0, 0, 0], sizes = [2, 1, 64], strides = [1, 1, 1]} : vector<2x4x64xf32> to vector<2x1x64xf32>
    %111 = vector.shape_cast %110 : vector<2x1x64xf32> to vector<2x64xf32>
    %112 = vector.extract_strided_slice %109 {offsets = [0, 1, 0], sizes = [2, 1, 64], strides = [1, 1, 1]} : vector<2x4x64xf32> to vector<2x1x64xf32>
    %113 = vector.shape_cast %112 : vector<2x1x64xf32> to vector<2x64xf32>
    %114 = vector.extract_strided_slice %109 {offsets = [0, 2, 0], sizes = [2, 1, 64], strides = [1, 1, 1]} : vector<2x4x64xf32> to vector<2x1x64xf32>
    %115 = vector.shape_cast %114 : vector<2x1x64xf32> to vector<2x64xf32>
    %116 = vector.extract_strided_slice %109 {offsets = [0, 3, 0], sizes = [2, 1, 64], strides = [1, 1, 1]} : vector<2x4x64xf32> to vector<2x1x64xf32>
    %117 = vector.shape_cast %116 : vector<2x1x64xf32> to vector<2x64xf32>
    %118 = tpu.concatenate %111, %113, %115, %117 in 1 : vector<2x64xf32>, vector<2x64xf32>, vector<2x64xf32>, vector<2x64xf32> -> vector<2x256xf32>
    %119 = arith.truncf %118 : vector<2x256xf32> to vector<2x256xbf16>
    %c0_79 = arith.constant 0 : index
    %c0_80 = arith.constant 0 : index
    %120 = vector.load %arg5[%c0_79, %c0_80] : memref<256x32xbf16, #tpu.memory_space<vmem>>, vector<256x32xbf16>
    %cst_81 = arith.constant dense<0.000000e+00> : vector<2x32xf32>
    %121 = tpu.matmul %119, %120, %cst_81 {dimension_numbers = #tpu.dot_dimension_numbers<[1], [0], [0], [1], [0, 0, 1, 1], [], []>} : vector<2x256xbf16>, vector<256x32xbf16>, vector<2x32xf32> -> vector<2x32xf32>
    %c0_82 = arith.constant 0 : index
    %c0_83 = arith.constant 0 : index
    %122 = vector.load %arg6[%c0_82, %c0_83] : memref<1x32xf32, #tpu.memory_space<vmem>>, vector<1x32xf32>
    %123 = vector.broadcast %122 : vector<1x32xf32> to vector<2x32xf32>
    %124 = arith.addf %121, %123 : vector<2x32xf32>
    %c0_84 = arith.constant 0 : index
    %c0_85 = arith.constant 0 : index
    %125 = vector.load %arg10[%c0_84, %c0_85] : memref<2x32xf32, #tpu.memory_space<vmem>>, vector<2x32xf32>
    tpu.vector_store %arg10[%c0_84, %c0_85], %124 {strides = array<i32>} : memref<2x32xf32, #tpu.memory_space<vmem>>, vector<2x32xf32>,
    %126 = arith.truncf %124 : vector<2x32xf32> to vector<2x32xbf16>
    %c0_86 = arith.constant 0 : index
    %c0_87 = arith.constant 0 : index
    %127 = vector.load %arg7[%c0_86, %c0_87] : memref<32x10xbf16, #tpu.memory_space<vmem>>, vector<32x10xbf16>
    %cst_88 = arith.constant dense<0.000000e+00> : vector<2x10xf32>
    %128 = tpu.matmul %126, %127, %cst_88 {dimension_numbers = #tpu.dot_dimension_numbers<[1], [0], [0], [1], [0, 0, 1, 1], [], []>} : vector<2x32xbf16>, vector<32x10xbf16>, vector<2x10xf32> -> vector<2x10xf32>
    %c0_89 = arith.constant 0 : index
    %c0_90 = arith.constant 0 : index
    %129 = vector.load %arg8[%c0_89, %c0_90] : memref<1x10xf32, #tpu.memory_space<vmem>>, vector<1x10xf32>
    %130 = vector.broadcast %129 : vector<1x10xf32> to vector<2x10xf32>
    %131 = arith.addf %128, %130 : vector<2x10xf32>
    %c0_91 = arith.constant 0 : index
    %c0_92 = arith.constant 0 : index
    %132 = vector.load %arg11[%c0_91, %c0_92] : memref<2x10xf32, #tpu.memory_space<vmem>>, vector<2x10xf32>
    tpu.vector_store %arg11[%c0_91, %c0_92], %131 {strides = array<i32>} : memref<2x10xf32, #tpu.memory_space<vmem>>, vector<2x10xf32>,
    return
  }
}

</mosaic_0001>

<bundles_post_ra>
// kernel: forward.1
= control target key start
LH: loop header
LB: loop body
LE: loop exit
PB: predicated region body
PF: predicated region fallthrough
CT: control target
= control target key end

     0   :  { %17 = vsyncpa [#allocation5], 0  ;;  %vm42_vm0 = vcmask 581632   ;;  %s2017_s23 = smov 4   ;;  %v2018_v4 = vmov 0.0   ;;  %vm47_vm1 = vcmask 31744   ;;  %s2575_s0 = inlined_call_operand.vmem [shape: f32[2,16,64], index: 0, kind: input, shape index: {}]   ;;  %s2576_s1 = inlined_call_operand.vmem [shape: bf16[3,72,128], index: 1, kind: input, shape index: {}]   ;;  %s2577_s2 = inlined_call_operand.vmem [shape: f32[1,128], index: 2, kind: input, shape index: {}]   ;;  %s2578_s3 = inlined_call_operand.vmem [shape: bf16[3,80,128], index: 3, kind: input, shape index: {}]   ;;  %s2579_s4 = inlined_call_operand.vmem [shape: f32[1,128], index: 4, kind: input, shape index: {}]   ;;  %s2580_s5 = inlined_call_operand.vmem [shape: bf16[256,32], index: 5, kind: input, shape index: {}]   ;;  %s2581_s6 = inlined_call_operand.vmem [shape: f32[1,32], index: 6, kind: input, shape index: {}]   ;;  %s2582_s7 = inlined_call_operand.vmem [shape: bf16[32,10], index: 7, kind: input, shape index: {}]   ;;  %s2583_s8 = inlined_call_operand.vmem [shape: f32[1,10], index: 8, kind: input, shape index: {}]   ;;  %s2584_s9 = inlined_call_operand.vmem [shape: f32[16,128], index: 9, kind: output, shape index: {0}]   ;;  %s2585_s10 = inlined_call_operand.hbm [shape: f32[2,32], index: 10, kind: output, shape index: {1}]   ;;  %s2586_s11 = inlined_call_operand.hbm [shape: f32[2,10], index: 11, kind: output, shape index: {2}]  }
   0x1   :  { %v40_v0 = vld [vmem:[%s2575_s0 + $0x10] sm:$0xff]  ;;  %v38_v1 = vld [vmem:[%s2575_s0] sm:$0xff]  ;;  %v41_v2 = vld [vmem:[%s2575_s0 + $0x18] sm:$0xff]  ;;  %44 = vst.msk [vmem:[#allocation2 + $0x18] sm:$0x1] %vm42_vm0, %v2018_v4  ;;  %vm55_vm2 = vcmask 589344  }
   0x2   :  { %71 = vrot.lane.b32.xlu1 %v40_v0, %s2017_s23  ;;  %67 = vrot.lane.b32.xlu0 %v38_v1, %s2017_s23  ;;  %v39_v3 = vld [vmem:[%s2575_s0 + $0x8] sm:$0xff]  ;;  %43 = vst.msk [vmem:[#allocation2] sm:$0x1] %vm42_vm0, %v2018_v4  ;;  %45 = vst.msk [vmem:[#allocation2 + $0x11] sm:$0x1] %vm42_vm0, %v2018_v4  ;;  %vm50_vm3 = vcmask 25600  }
   0x3   :  { %46 = vst.msk [vmem:[#allocation2 + $0x29] sm:$0x1] %vm42_vm0, %v2018_v4  ;;  %v1921_v5 = vld [vmem:[%s2576_s1 + $0x24] sm:$0xff]   ;;  %vm58_vm4 = vcmask 583200   ;;  %v1923_v7 = vld [vmem:[%s2576_s1 + $0x2c] sm:$0xff]   ;;  %v1925_v9 = vld [vmem:[%s2576_s1 + $0x34] sm:$0xff]  }
   0x4   :  { %52 = vst.msk [vmem:[#allocation2 + $0x18] sm:$0xff] %vm47_vm1, %v2018_v4  ;;  %53 = vst.msk [vmem:[#allocation2 + $0x20] sm:$0xff] %vm47_vm1, %v2018_v4  ;;  %v1922_v6 = vld [vmem:[%s2576_s1] sm:$0xff]   ;;  %1798 = vmatprep.subr.bf16.mxu0 %v1921_v5  ;;  %v1924_v8 = vld [vmem:[%s2576_s1 + $0x8] sm:$0xff]   ;;  %vm134_vm5 = vcmask 1043456  }
   0x5   :  { %49 = vst.msk [vmem:[#allocation2 + $0x8] sm:$0xff] %vm47_vm1, %v2018_v4  ;;  %48 = vst.msk [vmem:[#allocation2] sm:$0xff] %vm47_vm1, %v2018_v4  ;;  %1784 = vmatprep.subr.bf16.mxu1 %v1922_v6  ;;  %1799 = vmatpush3.bf16.msra.mxu0 %v1921_v5  ;;  %v1926_v10 = vld [vmem:[%s2576_s1 + $0x10] sm:$0xff]   ;;  %v1927_v11 = vld [vmem:[%s2576_s1 + $0x3c] sm:$0xff]  }
   0x6   :  { %60 = vst.msk [vmem:[#allocation2 + $0x18] sm:$0xff] %vm55_vm2, %v2018_v4  ;;  %61 = vst.msk [vmem:[#allocation2 + $0x20] sm:$0xff] %vm55_vm2, %v2018_v4  ;;  %73 = vrot.lane.b32.xlu1 %v41_v2, %s2017_s23  ;;  %69 = vrot.lane.b32.xlu0 %v39_v3, %s2017_s23  ;;  %v1928_v12 = vld [vmem:[%s2576_s1 + $0x18] sm:$0xff]   ;;  %v1929_v13 = vld [vmem:[%s2576_s1 + $0x44] ss:$0 sps:$4 sm:$0xff]  }
   0x7   :  { %56 = vst.msk [vmem:[#allocation2] sm:$0xff] %vm55_vm2, %v2018_v4  ;;  %57 = vst.msk [vmem:[#allocation2 + $0x8] sm:$0xff] %vm55_vm2, %v2018_v4  ;;  %1785 = vmatpush3.bf16.msra.mxu1 %v1922_v6  ;;  %1800 = vmatprep.subr.bf16.mxu0 %v1923_v7  ;;  %v1930_v14 = vld [vmem:[%s2576_s1 + $0x20] ss:$0 sps:$4 sm:$0xff]   ;;  %v247_v15 = vsel %vm134_vm5, %v1929_v13, 0  ;;  %v1931_v17 = vld [vmem:[%s2576_s1 + $0x48] sm:$0xff]  }
   0x8   :  { %54 = vst.msk [vmem:[#allocation2 + $0x28] sm:$0x3] %vm50_vm3, %v2018_v4  ;;  %51 = vst.msk [vmem:[#allocation2 + $0x10] sm:$0x3] %vm50_vm3, %v2018_v4  ;;  %1786 = vmatprep.subr.bf16.mxu1 %v1924_v8  ;;  %v136_v16 = vsel %vm134_vm5, %v1930_v14, 0 }
   0x9   :  { %62 = vst.msk [vmem:[#allocation2 + $0x28] sm:$0x3] %vm58_vm4, %v2018_v4  ;;  %59 = vst.msk [vmem:[#allocation2 + $0x10] sm:$0x3] %vm58_vm4, %v2018_v4  ;;  %1801 = vmatpush3.bf16.msra.mxu0 %v1923_v7 }
   0xa   :  { %1802 = vmatprep.subr.bf16.mxu0 %v1925_v9 }
   0xb   :  { %1787 = vmatpush3.bf16.msra.mxu1 %v1924_v8 }
   0xc   :  { %1788 = vmatprep.subr.bf16.mxu1 %v1926_v10 }
   0xd   :  { %1803 = vmatpush3.bf16.msra.mxu0 %v1925_v9 }
   0xe   :  { %1804 = vmatprep.subr.bf16.mxu0 %v1927_v11 }
   0xf   :  { %1789 = vmatpush3.bf16.msra.mxu1 %v1926_v10 }
  0x10   :  { %1790 = vmatprep.subr.bf16.mxu1 %v1928_v12 }
  0x11   :  { %1805 = vmatpush3.bf16.msra.mxu0 %v1927_v11 }
  0x12   :  { %1899 = vmatprep.subr.msk.bf16.mxu0 %vm134_vm5, %v1929_v13 }
  0x13   :  { %1791 = vmatpush3.bf16.msra.mxu1 %v1928_v12 }
  0x14   :  { %1898 = vmatprep.subr.msk.bf16.mxu1 %vm134_vm5, %v1930_v14 }
  0x15   :  { %1807 = vmatpush3.bf16.msra.mxu0 %v247_v15 }
  0x16   :  { %1812 = vmatprep.subr.bf16.mxu0 %v1931_v17 }
  0x17   :  { %1793 = vmatpush3.bf16.msra.mxu1 %v136_v16 }
  0x18   :  { %1826 = vmatprep.subr.bf16.mxu1 %v2018_v4 }
  0x19   :  { %18 = vsyncpa [#allocation7], 0  ;;  %vm79_vm6 = vcmask 556064   ;;  %vm127_vm7 = vcmask 588800   ;;  %v1932_v36 = vld [vmem:[%s2576_s1 + $0x50] sm:$0xff]   ;;  %v1933_v38 = vld [vmem:[%s2576_s1 + $0x58] sm:$0xff]   ;;  %v419_v51 = vlaneseq }
  0x1a   :  { %v1934_v39 = vld [vmem:[%s2576_s1 + $0x60] sm:$0xff]   ;;  %v1935_v40 = vld [vmem:[%s2576_s1 + $0x68] ss:$0 sps:$4 sm:$0xff]   ;;  %v2019_v49 = vmov 1983009808   ;;  %vm499_vm8 = vcmask 1041408  }
  0x1b   :  { %v352_v41 = vsel %vm134_vm5, %v1935_v40, 0  ;;  %v417_v50 = vunpack.c.l.s4 %v2019_v49  ;;  %v1627_v52 = vld [vmem:[%s2577_s2] ss:$0 sm:$0xff]  ;;  %v2181_v54 = vshrl.u32 %v419_v51, 7  ;;  %s2020_s2 = smov 120   ;;  %vm709_vm9 = vcmask 1041409  }
  0x1c   :  { %vm712_vm10 = vcmask 1042434   ;;  %vm715_vm11 = vcmask 1043459   ;;  %vm718_vm12 = vcmask 1044484   ;;  %vm721_vm13 = vcmask 1045509   ;;  %s2021_s17 = smov 112   ;;  %s2022_s18 = smov 104  }
  0x1d   :  { %v418_v53 = vunpack.c.0.s8 %v417_v50  ;;  %vm724_vm14 = vcmask 1046534   ;;  %vm727_vm15 = vcmask 1047559   ;;  %s2023_s19 = smov 96   ;;  %vm808_vm0 = vcmask 647168   ;;  %s2024_s24 = smov 88  }
  0x1e   :  { %vm814_vm1 = vcmask 58368   ;;  %vm818_vm2 = vcmask 654912   ;;  %vm820_vm3 = vcmask 648768   ;;  %vm787_vm4 = vcmask 64512   ;;  %810 = vst.msk [vmem:[#allocation3 + $0x10] sm:$0x1] %vm808_vm0, %v2018_v4 }
  0x1f   :  { %v2184_v60 = vsub.s32 %v418_v53, %v2181_v54  ;;  %812 = vst.msk [vmem:[#allocation3 + $0x19] sm:$0x1] %vm808_vm0, %v2018_v4  ;;  %809 = vst.msk [vmem:[#allocation3] sm:$0x1] %vm808_vm0, %v2018_v4  ;;  %s2025_s27 = smov 80   ;;  %s2026_s0 = smov 72  }
  0x20   :  { %811 = vst.msk [vmem:[#allocation3 + $0x9] sm:$0x1] %vm808_vm0, %v2018_v4  ;;  %vm796_vm0 = vcmask 261120   ;;  %s2028_s13 = smov 8  }
  0x21   :  { %816 = vst.msk [vmem:[#allocation3 + $0x10] sm:$0xff] %vm787_vm4, %v2018_v4  ;;  %813 = vst.msk [vmem:[#allocation3] sm:$0xff] %vm787_vm4, %v2018_v4 }
  0x22   :  { %817 = vst.msk [vmem:[#allocation3 + $0x18] sm:$0x3] %vm814_vm1, %v2018_v4  ;;  %815 = vst.msk [vmem:[#allocation3 + $0x8] sm:$0x3] %vm814_vm1, %v2018_v4  ;;  %vm799_vm1 = vcmask 326656  }
  0x23   :  { %822 = vst.msk [vmem:[#allocation3 + $0x10] sm:$0xff] %vm818_vm2, %v2018_v4  ;;  %819 = vst.msk [vmem:[#allocation3] sm:$0xff] %vm818_vm2, %v2018_v4  ;;  %vm802_vm2 = vcmask 392192  }
  0x24   :  { %823 = vst.msk [vmem:[#allocation3 + $0x18] sm:$0x3] %vm820_vm3, %v2018_v4  ;;  %821 = vst.msk [vmem:[#allocation3 + $0x8] sm:$0x3] %vm820_vm3, %v2018_v4  ;;  %vm805_vm3 = vcmask 457728  }
  0x74   :  { %v72_v18 = vpop.permute.xlu1 %71  ;;  %v68_v19 = vpop.permute.xlu0 %67 }
  0x75   :  { %82 = vst.msk [vmem:[#allocation2 + $0x19] sm:$0xff] %vm79_vm6, %v72_v18  ;;  %80 = vst.msk [vmem:[#allocation2 + $0x1] sm:$0xff] %vm79_vm6, %v68_v19 }
  0x78   :  { %v74_v20 = vpop.permute.xlu1 %73  ;;  %v70_v21 = vpop.permute.xlu0 %69 }
  0x79   :  { %83 = vst.msk [vmem:[#allocation2 + $0x21] sm:$0xff] %vm79_vm6, %v74_v20  ;;  %81 = vst.msk [vmem:[#allocation2 + $0x9] sm:$0xff] %vm79_vm6, %v70_v21  ;;  %vm790_vm6 = vcmask 130048  }
  0x7c   :  { %v85_v22 = vld [vmem:[#allocation2] sm:$0xff]  ;;  %v87_v24 = vld [vmem:[#allocation2 + $0x18] sm:$0xff] }
  0x7d   :  { %v197_v23 = vld [vmem:[#allocation2 + $0x1] sm:$0xff]  ;;  %v199_v25 = vld [vmem:[#allocation2 + $0x19] sm:$0xff] }
  0x80   :  { %v86_v26 = vld [vmem:[#allocation2 + $0x8] sm:$0xff]  ;;  %v88_v28 = vld [vmem:[#allocation2 + $0x20] sm:$0xff] }
  0x81   :  { %v198_v27 = vld [vmem:[#allocation2 + $0x9] sm:$0xff]  ;;  %v89_v29 = vpack.c.bf16 %v86_v26, %v85_v22  ;;  %v90_v31 = vpack.c.bf16 %v88_v28, %v87_v24  ;;  %v200_v32 = vld [vmem:[#allocation2 + $0x21] sm:$0xff] }
  0x82   :  { %v201_v30 = vpack.c.bf16 %v198_v27, %v197_v23  ;;  %v302_v33 = vld [vmem:[#allocation2 + $0x2] sm:$0xff]  ;;  %v303_v34 = vld [vmem:[#allocation2 + $0xa] sm:$0xff]  ;;  %v202_v35 = vpack.c.bf16 %v200_v32, %v199_v25  ;;  %v304_v42 = vld [vmem:[#allocation2 + $0x1a] sm:$0xff] }
  0x83   :  { %1794 = vmatprep.mubr.msk.bf16.mxu1 %vm127_vm7, %v89_v29  ;;  %v306_v37 = vpack.c.bf16 %v303_v34, %v302_v33  ;;  %v305_v43 = vld [vmem:[#allocation2 + $0x22] sm:$0xff] }
  0x84   :  { %1808 = vmatprep.mubr.msk.bf16.mxu0 %vm127_vm7, %v201_v30  ;;  %1795 = vmatmul.mubr.msk.bf16.vlgmr.msra.gmra.mrb[0].mxu1 %vm127_vm7, %v90_v31  ;;  %v307_v44 = vpack.c.bf16 %v305_v43, %v304_v42 }
  0x85   :  { %1809 = vmatmul.mubr.msk.bf16.vlgmr.msra.gmra.mrb[0].mxu0 %vm127_vm7, %v202_v35 }
  0x86   :  { %1813 = vmatpush3.bf16.msra.mxu0 %v1931_v17  ;;  %1822 = vmatprep.mubr.msk.bf16.mxu0 %vm127_vm7, %v306_v37 }
  0x87   :  { %1814 = vmatprep.subr.bf16.mxu0 %v1932_v36 }
  0x8a   :  { %1815 = vmatpush3.bf16.msra.mxu0 %v1932_v36 }
  0x8b   :  { %1816 = vmatprep.subr.bf16.mxu0 %v1933_v38 }
  0x8e   :  { %1817 = vmatpush3.bf16.msra.mxu0 %v1933_v38 }
  0x8f   :  { %1818 = vmatprep.subr.bf16.mxu0 %v1934_v39 }
  0x92   :  { %1819 = vmatpush3.bf16.msra.mxu0 %v1934_v39 }
  0x93   :  { %1900 = vmatprep.subr.msk.bf16.mxu0 %vm134_vm5, %v1935_v40  ;;  %vm2027_vm5 = vmmov 0  }
  0x94   :  { %1836 = vmatprep.mubr.msk.bf16.mxu1 %vm2027_vm5, %v2018_v4 }
  0x96   :  { %1821 = vmatpush3.bf16.msra.mxu0 %v352_v41 }
  0x99   :  { %1823 = vmatmul.mubr.msk.bf16.vlgmr.msra.gmra.mrb[0].mxu0 %vm127_vm7, %v307_v44  ;;  %vm793_vm7 = vcmask 195584  }
 0x157   :  { %v1796_v45 = vpop.f32.mrb[0].mxu1 }
 0x158   :  { %v172_v46 = vpop.f32.mrb[1].mxu1  ;;  %v195_v55 = vadd.f32 %v1796_v45, %v1627_v52 }
 0x159   :  { %v1797_v47 = vpop.f32.mrb[2].mxu1  ;;  %v193_v56 = vadd.f32 %v1627_v52, %v172_v46 }
 0x15a   :  { %v175_v48 = vpop.f32.mrb[3].mxu1  ;;  %v196_v58 = vadd.f32 %v1797_v47, %v1627_v52 }
 0x15b   :  { %v194_v62 = vadd.f32 %v1627_v52, %v175_v48 }
 0x16c   :  { %v1824_v57 = vpop.f32.mrb[0].mxu0 }
 0x16d   :  { %v1877_v59 = vadd.f32 %v1824_v57, %v195_v55  ;;  %v388_v61 = vpop.f32.mrb[1].mxu0 }
 0x16e   :  { %v1879_v63 = vadd.f32 %v388_v61, %v193_v56  ;;  %v1825_v0 = vpop.f32.mrb[2].mxu0 }
 0x16f   :  { %v409_v1 = vmax.f32 %v1877_v59, 0.0  ;;  %v1881_v2 = vadd.f32 %v1825_v0, %v196_v58  ;;  %v391_v3 = vpop.f32.mrb[3].mxu0 }
 0x170   :  { %v407_v5 = vmax.f32 %v1879_v63, 0.0  ;;  %v1883_v6 = vadd.f32 %v391_v3, %v194_v62 }
 0x171   :  { %v449_v7 = vcombine.high %v409_v1, %v409_v1  ;;  %v456_v8 = vrot.slane %v409_v1, %v2184_v60  ;;  %v410_v9 = vmax.f32 %v1881_v2, 0.0 }
 0x172   :  { %v415_v10 = vcombine.high %v407_v5, %v407_v5  ;;  %v422_v11 = vrot.slane %v407_v5, %v2184_v60  ;;  %v408_v12 = vmax.f32 %v1883_v6, 0.0 }
 0x173   :  { %v463_v13 = vrot.slane %v449_v7, %v2184_v60  ;;  %v464_v14 = vcombine.high %v456_v8, %v456_v8  ;;  %v556_v15 = vsel %vm499_vm8, %v456_v8, -inf  ;;  %v466_v16 = vcombine.high %v410_v9, %v410_v9 }
 0x174   :  { %v557_v17 = vrot.slane %v556_v15, 4  ;;  %v2191_v18 = vrot.slane %v415_v10, %v2184_v60  ;;  %v430_v19 = vcombine.high %v422_v11, %v422_v11  ;;  %v500_v20 = vsel %vm499_vm8, %v422_v11, -inf }
 0x175   :  { %v563_v21 = vsel %vm499_vm8, %v464_v14, -inf  ;;  %v570_v22 = vsel %vm499_vm8, %v463_v13, -inf  ;;  %v501_v24 = vrot.slane %v500_v20, 4  ;;  %v465_v25 = vcombine.high %v463_v13, %v463_v13 }
 0x176   :  { %v558_v23 = vmax.f32 %v556_v15, %v557_v17  ;;  %v564_v26 = vrot.slane %v563_v21, 4  ;;  %v571_v27 = vrot.slane %v570_v22, 4  ;;  %v473_v28 = vrot.slane %v410_v9, %v2184_v60 }
 0x177   :  { %v507_v29 = vsel %vm499_vm8, %v430_v19, -inf  ;;  %v514_v30 = vsel %vm499_vm8, %v2191_v18, -inf  ;;  %v2201_v31 = vrot.slane %v466_v16, %v2184_v60  ;;  %v432_v32 = vcombine.high %v408_v12, %v408_v12 }
 0x178   :  { %v481_v33 = vcombine.high %v473_v28, %v473_v28  ;;  %v584_v34 = vsel %vm499_vm8, %v473_v28, -inf  ;;  %v439_v35 = vrot.slane %v408_v12, %v2184_v60  ;;  %v559_v36 = vrot.slane %v558_v23, 2 }
 0x179   :  { %v431_v37 = vcombine.high %v2191_v18, %v2191_v18  ;;  %v502_v38 = vmax.f32 %v500_v20, %v501_v24  ;;  %v585_v39 = vrot.slane %v584_v34, 4  ;;  %v2208_v40 = vrot.slane %v432_v32, %v2184_v60 }
 0x17a   :  { %v508_v41 = vrot.slane %v507_v29, 4  ;;  %v591_v42 = vsel %vm499_vm8, %v481_v33, -inf  ;;  %v447_v43 = vcombine.high %v439_v35, %v439_v35  ;;  %v528_v44 = vsel %vm499_vm8, %v439_v35, -inf }
 0x17b   :  { %v515_v45 = vrot.slane %v514_v30, 4  ;;  %v586_v46 = vmax.f32 %v584_v34, %v585_v39  ;;  %v598_v47 = vsel %vm499_vm8, %v2201_v31, -inf  ;;  %v529_v48 = vrot.slane %v528_v44, 4 }
 0x17c   :  { %v592_v49 = vrot.slane %v591_v42, 4  ;;  %v535_v50 = vsel %vm499_vm8, %v447_v43, -inf  ;;  %v560_v51 = vmax.f32 %v558_v23, %v559_v36  ;;  %v565_v52 = vmax.f32 %v563_v21, %v564_v26 }
 0x17d   :  { %v530_v53 = vmax.f32 %v528_v44, %v529_v48  ;;  %v536_v55 = vrot.slane %v535_v50, 4  ;;  %v542_v56 = vsel %vm499_vm8, %v2208_v40, -inf  ;;  %v503_v57 = vrot.slane %v502_v38, 2 }
 0x17e   :  { %v561_v58 = vrot.slane %v560_v51, 1  ;;  %v566_v59 = vrot.slane %v565_v52, 2  ;;  %v572_v61 = vmax.f32 %v570_v22, %v571_v27  ;;  %v509_v62 = vmax.f32 %v507_v29, %v508_v41 }
 0x17f   :  { %v504_v63 = vmax.f32 %v502_v38, %v503_v57  ;;  %v587_v0 = vrot.slane %v586_v46, 2  ;;  %v516_v1 = vmax.f32 %v514_v30, %v515_v45  ;;  %v577_v2 = vsel %vm499_vm8, %v465_v25, -inf }
 0x180   :  { %v2218_v3 = vmax.f32 %v560_v51, %v561_v58  ;;  %v567_v5 = vmax.f32 %v565_v52, %v566_v59  ;;  %v573_v6 = vrot.slane %v572_v61, 2  ;;  %v510_v7 = vrot.slane %v509_v62, 2 }
 0x181   :  { %v505_v8 = vrot.slane %v504_v63, 1  ;;  %v588_v9 = vmax.f32 %v586_v46, %v587_v0  ;;  %v517_v10 = vrot.slane %v516_v1, 2  ;;  %v578_v11 = vrot.slane %v577_v2, 4 }
 0x182   :  { %644 = vrot.lane.b32.xlu0 %v2218_v3, %s2020_s2  ;;  %v568_v12 = vrot.slane %v567_v5, 1  ;;  %v574_v13 = vmax.f32 %v572_v61, %v573_v6  ;;  %v511_v14 = vmax.f32 %v509_v62, %v510_v7  ;;  %v531_v15 = vrot.slane %v530_v53, 2 }
 0x183   :  { %v599_v16 = vrot.slane %v598_v47, 4  ;;  %v543_v17 = vrot.slane %v542_v56, 4  ;;  %v518_v19 = vmax.f32 %v516_v1, %v517_v10  ;;  %v579_v20 = vmax.f32 %v577_v2, %v578_v11 }
 0x184   :  { %v2222_v21 = vmax.f32 %v567_v5, %v568_v12  ;;  %v2224_v22 = vmax.f32 %v504_v63, %v505_v8  ;;  %v575_v23 = vrot.slane %v574_v13, 1  ;;  %v512_v24 = vrot.slane %v511_v14, 1 }
 0x185   :  { %v482_v25 = vcombine.high %v2201_v31, %v2201_v31  ;;  %v589_v26 = vrot.slane %v588_v9, 1  ;;  %v580_v27 = vrot.slane %v579_v20, 2  ;;  %v593_v28 = vmax.f32 %v591_v42, %v592_v49 }
 0x186   :  { %v448_v29 = vcombine.high %v2208_v40, %v2208_v40  ;;  %646 = vrot.lane.b32.xlu1 %v2222_v21, %s2020_s2  ;;  %628 = vrot.lane.b32.xlu0 %v2224_v22, %s2020_s2  ;;  %v519_v30 = vrot.slane %v518_v19, 1  ;;  %v532_v32 = vmax.f32 %v530_v53, %v531_v15  ;;  %v537_v33 = vmax.f32 %v535_v50, %v536_v55 }
 0x187   :  { %v2234_v34 = vmax.f32 %v574_v13, %v575_v23  ;;  %v581_v35 = vmax.f32 %v579_v20, %v580_v27  ;;  %v594_v36 = vrot.slane %v593_v28, 2  ;;  %v600_v31 = vmax.f32 %v598_v47, %v599_v16 }
 0x188   :  { %v2236_v38 = vmax.f32 %v511_v14, %v512_v24  ;;  %v538_v39 = vrot.slane %v537_v33, 2  ;;  %v544_v41 = vmax.f32 %v542_v56, %v543_v17  ;;  %v521_v40 = vsel %vm499_vm8, %v431_v37, -inf }
 0x189   :  { %v2242_v42 = vmax.f32 %v588_v9, %v589_v26  ;;  %v522_v43 = vrot.slane %v521_v40, 4  ;;  %v2248_v44 = vmax.f32 %v518_v19, %v519_v30  ;;  %v533_v45 = vrot.slane %v532_v32, 1 }
 0x18a   :  { %648 = vrot.lane.b32.xlu1 %v2234_v34, %s2020_s2  ;;  %630 = vrot.lane.b32.xlu0 %v2236_v38, %s2020_s2  ;;  %v549_v46 = vsel %vm499_vm8, %v448_v29, -inf  ;;  %v605_v47 = vsel %vm499_vm8, %v482_v25, -inf  ;;  %v582_v48 = vrot.slane %v581_v35, 1  ;;  %v595_v18 = vmax.f32 %v593_v28, %v594_v36 }
 0x18b   :  { %v539_v49 = vmax.f32 %v537_v33, %v538_v39  ;;  %v601_v37 = vrot.slane %v600_v31, 2  ;;  %v545_v50 = vrot.slane %v544_v41, 2  ;;  %v523_v51 = vmax.f32 %v521_v40, %v522_v43 }
 0x18c   :  { %v550_v52 = vrot.slane %v549_v46, 4  ;;  %v606_v53 = vrot.slane %v605_v47, 4  ;;  %v2256_v55 = vmax.f32 %v532_v32, %v533_v45  ;;  %v583_v57 = vmax.f32 %v581_v35, %v582_v48 }
 0x18d   :  { %v596_v58 = vrot.slane %v595_v18, 1  ;;  %v540_v59 = vrot.slane %v539_v49, 1  ;;  %v602_v61 = vmax.f32 %v600_v31, %v601_v37  ;;  %v546_v62 = vmax.f32 %v544_v41, %v545_v50 }
 0x18e   :  { %652 = vrot.lane.b32.xlu1 %v2242_v42, %s2020_s2  ;;  %632 = vrot.lane.b32.xlu0 %v2248_v44, %s2020_s2  ;;  %v551_v56 = vmax.f32 %v549_v46, %v550_v52  ;;  %v524_v63 = vrot.slane %v523_v51, 2  ;;  %v607_v1 = vmax.f32 %v605_v47, %v606_v53 }
 0x18f   :  { %v2261_v2 = vmax.f32 %v595_v18, %v596_v58  ;;  %v2263_v5 = vmax.f32 %v539_v49, %v540_v59  ;;  %v603_v6 = vrot.slane %v602_v61, 1  ;;  %v547_v7 = vrot.slane %v546_v62, 1 }
 0x190   :  { %v552_v0 = vrot.slane %v551_v56, 2  ;;  %v525_v8 = vmax.f32 %v523_v51, %v524_v63  ;;  %v608_v10 = vrot.slane %v607_v1, 2 }
 0x191   :  { %v2269_v11 = vmax.f32 %v602_v61, %v603_v6  ;;  %v2271_v12 = vmax.f32 %v546_v62, %v547_v7 }
 0x192   :  { %650 = vrot.lane.b32.xlu1 %v583_v57, %s2020_s2  ;;  %636 = vrot.lane.b32.xlu0 %v2256_v55, %s2020_s2  ;;  %v553_v9 = vmax.f32 %v551_v56, %v552_v0  ;;  %v526_v13 = vrot.slane %v525_v8, 1  ;;  %v609_v15 = vmax.f32 %v607_v1, %v608_v10 }
 0x194   :  { %v554_v14 = vrot.slane %v553_v9, 1  ;;  %v527_v16 = vmax.f32 %v525_v8, %v526_v13  ;;  %v610_v19 = vrot.slane %v609_v15, 1 }
 0x196   :  { %654 = vrot.lane.b32.xlu1 %v2261_v2, %s2020_s2  ;;  %638 = vrot.lane.b32.xlu0 %v2263_v5, %s2020_s2  ;;  %v2277_v17 = vmax.f32 %v553_v9, %v554_v14  ;;  %v2282_v20 = vmax.f32 %v609_v15, %v610_v19 }
 0x19a   :  { %656 = vrot.lane.b32.xlu1 %v2269_v11, %s2020_s2  ;;  %640 = vrot.lane.b32.xlu0 %v2271_v12, %s2020_s2 }
 0x19e   :  { %634 = vrot.lane.b32.xlu1 %v527_v16, %s2020_s2  ;;  %642 = vrot.lane.b32.xlu0 %v2277_v17, %s2020_s2 }
 0x1a2   :  { %658 = vrot.lane.b32.xlu1 %v2282_v20, %s2020_s2 }
 0x1f4   :  { %v645_v23 = vpop.permute.xlu0 %644 }
 0x1f5   :  { %v684_v18 = vmax.f32 %v2218_v3, %v645_v23  ;;  %v1937_v23 = vld [vmem:[%s2578_s3 + $0x8] sm:$0xff]  }
 0x1f8   :  { %v647_v24 = vpop.permute.xlu1 %646  ;;  %v629_v25 = vpop.permute.xlu0 %628 }
 0x1f9   :  { %v685_v36 = vmax.f32 %v2222_v21, %v647_v24  ;;  %v676_v49 = vmax.f32 %v2224_v22, %v629_v25  ;;  %v1938_v24 = vld [vmem:[%s2578_s3 + $0x10] sm:$0xff]  }
 0x1fb   :  { %v729_v46 = vrot.slane %v685_v36, 7  ;;  %v1940_v36 = vld [vmem:[%s2578_s3 + $0x20] sm:$0xff]  }
 0x1fc   :  { %v649_v26 = vpop.permute.xlu1 %648  ;;  %v631_v27 = vpop.permute.xlu0 %630 }
 0x1fd   :  { %v686_v31 = vmax.f32 %v2234_v34, %v649_v26  ;;  %v677_v39 = vmax.f32 %v2236_v38, %v631_v27  ;;  %v730_v53 = vsel %vm709_vm9, %v729_v46, %v684_v18 }
 0x1ff   :  { %v731_v47 = vrot.slane %v686_v31, 6  ;;  %v708_v48 = vrot.slane %v677_v39, 7 }
 0x200   :  { %v653_v28 = vpop.permute.xlu1 %652  ;;  %v633_v29 = vpop.permute.xlu0 %632 }
 0x201   :  { %v678_v40 = vmax.f32 %v2248_v44, %v633_v29  ;;  %v688_v38 = vmax.f32 %v2242_v42, %v653_v28  ;;  %v732_v22 = vsel %vm712_vm10, %v731_v47, %v730_v53 }
 0x203   :  { %v711_v37 = vrot.slane %v678_v40, 6  ;;  %v735_v62 = vrot.slane %v688_v38, 4 }
 0x204   :  { %v651_v30 = vpop.permute.xlu1 %650  ;;  %v637_v32 = vpop.permute.xlu0 %636 }
 0x205   :  { %v687_v41 = vmax.f32 %v583_v57, %v651_v30  ;;  %v680_v44 = vmax.f32 %v2256_v55, %v637_v32  ;;  %v710_v57 = vsel %vm709_vm9, %v708_v48, %v676_v49 }
 0x206   :  { %v713_v63 = vsel %vm712_vm10, %v711_v37, %v710_v57 }
 0x207   :  { %v733_v21 = vrot.slane %v687_v41, 5  ;;  %v717_v0 = vrot.slane %v680_v44, 4 }
 0x208   :  { %v655_v33 = vpop.permute.xlu1 %654  ;;  %v639_v35 = vpop.permute.xlu0 %638 }
 0x209   :  { %v689_v34 = vmax.f32 %v2261_v2, %v655_v33  ;;  %v681_v56 = vmax.f32 %v2263_v5, %v639_v35  ;;  %v734_v58 = vsel %vm715_vm11, %v733_v21, %v732_v22  ;;  %v1939_v35 = vld [vmem:[%s2578_s3 + $0x18] sm:$0xff]  }
 0x20a   :  { %v736_v8 = vsel %vm718_vm12, %v735_v62, %v734_v58  ;;  %v1945_v62 = vld [vmem:[%s2578_s3 + $0x48] sm:$0xff]  }
 0x20b   :  { %v737_v55 = vrot.slane %v689_v34, 3  ;;  %v720_v5 = vrot.slane %v681_v56, 3 }
 0x20c   :  { %v657_v43 = vpop.permute.xlu1 %656  ;;  %v641_v45 = vpop.permute.xlu0 %640 }
 0x20d   :  { %v690_v50 = vmax.f32 %v2269_v11, %v657_v43  ;;  %v682_v42 = vmax.f32 %v2271_v12, %v641_v45  ;;  %v738_v11 = vsel %vm721_vm13, %v737_v55, %v736_v8  ;;  %v1942_v55 = vld [vmem:[%s2578_s3 + $0x30] sm:$0xff]  }
 0x20e   :  { %v1950_v8 = vld [vmem:[%s2578_s3 + $0x70] sm:$0xff]  }
 0x20f   :  { %v739_v1 = vrot.slane %v690_v50, 2  ;;  %v723_v9 = vrot.slane %v682_v42, 2  ;;  %v1941_v42 = vld [vmem:[%s2578_s3 + $0x28] sm:$0xff]  }
 0x210   :  { %v635_v51 = vpop.permute.xlu1 %634  ;;  %v643_v52 = vpop.permute.xlu0 %642 }
 0x211   :  { %v679_v3 = vmax.f32 %v527_v16, %v635_v51  ;;  %v683_v61 = vmax.f32 %v2277_v17, %v643_v52  ;;  %v740_v15 = vsel %vm724_vm14, %v739_v1, %v738_v11  ;;  %v1946_v1 = vld [vmem:[%s2578_s3 + $0x50] sm:$0xff]  }
 0x213   :  { %v714_v59 = vrot.slane %v679_v3, 5  ;;  %v726_v13 = vrot.slane %v683_v61, 1  ;;  %v1944_v61 = vld [vmem:[%s2578_s3 + $0x40] sm:$0xff]  }
 0x214   :  { %v659_v2 = vpop.permute.xlu1 %658 }
 0x215   :  { %v716_v6 = vsel %vm715_vm11, %v714_v59, %v713_v63  ;;  %v691_v7 = vmax.f32 %v2282_v20, %v659_v2  ;;  %v1936_v20 = vld [vmem:[%s2578_s3] sm:$0xff]   ;;  %v1943_v59 = vld [vmem:[%s2578_s3 + $0x38] sm:$0xff]  }
 0x216   :  { %v719_v10 = vsel %vm718_vm12, %v717_v0, %v716_v6  ;;  %1827 = vmatpush3.bf16.msra.mxu1 %v1936_v20  ;;  %v1948_v6 = vld [vmem:[%s2578_s3 + $0x60] sm:$0xff]  }
 0x217   :  { %v722_v12 = vsel %vm721_vm13, %v720_v5, %v719_v10  ;;  %v741_v14 = vrot.slane %v691_v7, 1  ;;  %1828 = vmatprep.subr.bf16.mxu1 %v2018_v4  ;;  %v1947_v5 = vld [vmem:[%s2578_s3 + $0x58] sm:$0xff]   ;;  %v1949_v7 = vld [vmem:[%s2578_s3 + $0x68] sm:$0xff]  }
 0x218   :  { %v725_v16 = vsel %vm724_vm14, %v723_v9, %v722_v12  ;;  %v1666_v12 = vld [vmem:[%s2579_s4] ss:$0 sm:$0xff] }
 0x219   :  { %v2313_v17 = vsel %vm727_vm15, %v726_v13, %v725_v16  ;;  %v2316_v19 = vsel %vm727_vm15, %v741_v14, %v740_v15 }
 0x21a   :  { %747 = vrot.lane.b32.xlu1 %v2316_v19, %s2020_s2  ;;  %745 = vrot.lane.b32.xlu0 %v2313_v17, %s2020_s2 }
 0x21b   :  { %1829 = vmatpush3.bf16.msra.mxu1 %v1937_v23 }
 0x21c   :  { %1830 = vmatprep.subr.bf16.mxu1 %v2018_v4 }
 0x21e   :  { %753 = vrot.lane.b32.xlu1 %v2316_v19, %s2021_s17  ;;  %751 = vrot.lane.b32.xlu0 %v2313_v17, %s2021_s17 }
 0x21f   :  { %1831 = vmatpush3.bf16.msra.mxu1 %v1938_v24 }
 0x220   :  { %1832 = vmatprep.subr.bf16.mxu1 %v2018_v4 }
 0x222   :  { %759 = vrot.lane.b32.xlu1 %v2316_v19, %s2022_s18  ;;  %757 = vrot.lane.b32.xlu0 %v2313_v17, %s2022_s18 }
 0x223   :  { %1833 = vmatpush3.bf16.msra.mxu1 %v1939_v35 }
 0x224   :  { %1834 = vmatprep.subr.bf16.mxu1 %v2018_v4 }
 0x226   :  { %765 = vrot.lane.b32.xlu1 %v2316_v19, %s2023_s19  ;;  %763 = vrot.lane.b32.xlu0 %v2313_v17, %s2023_s19 }
 0x227   :  { %1835 = vmatpush3.bf16.msra.mxu1 %v1940_v36 }
 0x228   :  { %1840 = vmatprep.subr.bf16.mxu1 %v2018_v4 }
 0x22a   :  { %771 = vrot.lane.b32.xlu1 %v2316_v19, %s2024_s24  ;;  %769 = vrot.lane.b32.xlu0 %v2313_v17, %s2024_s24 }
 0x22e   :  { %777 = vrot.lane.b32.xlu1 %v2316_v19, %s2025_s27  ;;  %775 = vrot.lane.b32.xlu0 %v2313_v17, %s2025_s27 }
 0x232   :  { %783 = vrot.lane.b32.xlu1 %v2316_v19, %s2026_s0  ;;  %781 = vrot.lane.b32.xlu0 %v2313_v17, %s2026_s0 }
 0x28c   :  { %v748_v25 = vpop.permute.xlu1 %747  ;;  %v746_v26 = vpop.permute.xlu0 %745 }
 0x28d   :  { %v789_v41 = vsel %vm787_vm4, %v2316_v19, %v748_v25  ;;  %v788_v40 = vsel %vm787_vm4, %v2313_v17, %v746_v26  ;;  %vm832_vm4 = vcmask 588864  }
 0x290   :  { %v754_v27 = vpop.permute.xlu1 %753  ;;  %v752_v28 = vpop.permute.xlu0 %751 }
 0x291   :  { %v792_v43 = vsel %vm790_vm6, %v789_v41, %v754_v27  ;;  %v791_v45 = vsel %vm790_vm6, %v788_v40, %v752_v28 }
 0x294   :  { %v760_v29 = vpop.permute.xlu1 %759  ;;  %v758_v30 = vpop.permute.xlu0 %757 }
 0x295   :  { %v795_v48 = vsel %vm793_vm7, %v792_v43, %v760_v29  ;;  %v794_v18 = vsel %vm793_vm7, %v791_v45, %v758_v30  ;;  %vm879_vm7 = vcmask 654336  }
 0x298   :  { %v766_v32 = vpop.permute.xlu1 %765  ;;  %v764_v33 = vpop.permute.xlu0 %763 }
 0x299   :  { %v798_v49 = vsel %vm796_vm0, %v795_v48, %v766_v32  ;;  %v797_v21 = vsel %vm796_vm0, %v794_v18, %v764_v33 }
 0x29c   :  { %v772_v31 = vpop.permute.xlu1 %771  ;;  %v770_v39 = vpop.permute.xlu0 %769 }
 0x29d   :  { %v801_v34 = vsel %vm799_vm1, %v798_v49, %v772_v31  ;;  %v800_v38 = vsel %vm799_vm1, %v797_v21, %v770_v39 }
 0x2a0   :  { %v778_v46 = vpop.permute.xlu1 %777  ;;  %v776_v47 = vpop.permute.xlu0 %775 }
 0x2a1   :  { %v804_v37 = vsel %vm802_vm2, %v801_v34, %v778_v46  ;;  %v803_v44 = vsel %vm802_vm2, %v800_v38, %v776_v47 }
 0x2a4   :  { %v784_v50 = vpop.permute.xlu1 %783  ;;  %v782_v51 = vpop.permute.xlu0 %781 }
 0x2a5   :  { %v807_v52 = vsel %vm805_vm3, %v804_v37, %v784_v50  ;;  %v806_v53 = vsel %vm805_vm3, %v803_v44, %v782_v51 }
 0x2a6   :  { %828 = vrot.lane.b32.xlu1 %v807_v52, %s2028_s13  ;;  %826 = vrot.lane.b32.xlu0 %v806_v53, %s2028_s13 }
 0x318   :  { %v829_v56 = vpop.permute.xlu1 %828  ;;  %v827_v3 = vpop.permute.xlu0 %826 }
 0x319   :  { %834 = vst.msk [vmem:[#allocation3 + $0x11] sm:$0xff] %vm832_vm4, %v829_v56  ;;  %833 = vst.msk [vmem:[#allocation3 + $0x1] sm:$0xff] %vm832_vm4, %v827_v3 }
 0x320   :  { %v836_v22 = vld [vmem:[#allocation3] sm:$0xff]  ;;  %v837_v57 = vld [vmem:[#allocation3 + $0x10] sm:$0xff] }
 0x321   :  { %v838_v58 = vpack.c.bf16 %v837_v57, %v836_v22  ;;  %v932_v63 = vld [vmem:[#allocation3 + $0x1] sm:$0xff]  ;;  %v933_v0 = vld [vmem:[#allocation3 + $0x11] sm:$0xff] }
 0x322   :  { %v934_v2 = vpack.c.bf16 %v933_v0, %v932_v63  ;;  %v1022_v9 = vld [vmem:[#allocation3 + $0x2] sm:$0xff]  ;;  %v1023_v10 = vld [vmem:[#allocation3 + $0x12] sm:$0xff] }
 0x323   :  { %1837 = vmatmul.mubr.msk.bf16.vlgmr.msra.gmra.mrb[4].mxu1 %vm879_vm7, %v838_v58  ;;  %v1024_v11 = vpack.c.bf16 %v1023_v10, %v1022_v9 }
 0x324   :  { %1841 = vmatpush3.bf16.msra.mxu1 %v1941_v42  ;;  %1850 = vmatprep.mubr.msk.bf16.mxu1 %vm2027_vm5, %v2018_v4 }
 0x325   :  { %1842 = vmatprep.subr.bf16.mxu1 %v2018_v4 }
 0x328   :  { %1843 = vmatpush3.bf16.msra.mxu1 %v1942_v55 }
 0x329   :  { %1844 = vmatprep.subr.bf16.mxu1 %v2018_v4 }
 0x32c   :  { %1845 = vmatpush3.bf16.msra.mxu1 %v1943_v59 }
 0x32d   :  { %1846 = vmatprep.subr.bf16.mxu1 %v2018_v4 }
 0x330   :  { %1847 = vmatpush3.bf16.msra.mxu1 %v1944_v61 }
 0x331   :  { %1848 = vmatprep.subr.bf16.mxu1 %v2018_v4 }
 0x334   :  { %1849 = vmatpush3.bf16.msra.mxu1 %v1945_v62 }
 0x335   :  { %1854 = vmatprep.subr.bf16.mxu1 %v2018_v4 }
 0x337   :  { %1851 = vmatmul.mubr.msk.bf16.vlgmr.msra.gmra.mrb[4].mxu1 %vm879_vm7, %v934_v2 }
 0x338   :  { %1855 = vmatpush3.bf16.msra.mxu1 %v1946_v1  ;;  %1864 = vmatprep.mubr.msk.bf16.mxu1 %vm2027_vm5, %v2018_v4 }
 0x339   :  { %1856 = vmatprep.subr.bf16.mxu1 %v2018_v4 }
 0x33c   :  { %1857 = vmatpush3.bf16.msra.mxu1 %v1947_v5 }
 0x33d   :  { %1858 = vmatprep.subr.bf16.mxu1 %v2018_v4 }
 0x340   :  { %1859 = vmatpush3.bf16.msra.mxu1 %v1948_v6 }
 0x341   :  { %1860 = vmatprep.subr.bf16.mxu1 %v2018_v4 }
 0x344   :  { %1861 = vmatpush3.bf16.msra.mxu1 %v1949_v7 }
 0x345   :  { %1862 = vmatprep.subr.bf16.mxu1 %v2018_v4 }
 0x348   :  { %1863 = vmatpush3.bf16.msra.mxu1 %v1950_v8 }
 0x34b   :  { %1865 = vmatmul.mubr.msk.bf16.vlgmr.msra.gmra.mrb[4].mxu1 %vm879_vm7, %v1024_v11 }
 0x41e   :  { %v1103_v13 = vpop.f32.mrb[4].mxu1 }
 0x41f   :  { %v1884_v14 = vadd.f32 %v1666_v12, %v1103_v13  ;;  %v1866_v15 = vpop.f32.mrb[5].mxu1 }
 0x420   :  { %v1106_v16 = vpop.f32.mrb[6].mxu1 }
 0x421   :  { %1112 = vst [vmem:[%s2584_s9] sm:$0xff] %v1884_v14  ;;  %v1114_v17 = vmax.f32 %v1884_v14, 0.0  ;;  %v1885_v19 = vadd.f32 %v1666_v12, %v1106_v16  ;;  %v1867_v20 = vpop.f32.mrb[7].mxu1 }
 0x423   :  { %v1118_v23 = vcombine.high %v1114_v17, %v1114_v17  ;;  %v1125_v24 = vrot.slane %v1114_v17, %v2184_v60  ;;  %1113 = vst [vmem:[%s2584_s9 + $0x8] sm:$0xff] %v1885_v19  ;;  %v1115_v25 = vmax.f32 %v1885_v19, 0.0 }
 0x425   :  { %v1132_v26 = vrot.slane %v1118_v23, %v2184_v60  ;;  %v1133_v27 = vcombine.high %v1125_v24, %v1125_v24  ;;  %v1160_v28 = vsel %vm499_vm8, %v1125_v24, -inf  ;;  %v1135_v29 = vcombine.high %v1115_v25, %v1115_v25 }
 0x426   :  { %v1161_v30 = vrot.slane %v1160_v28, 4  ;;  %v1142_v32 = vrot.slane %v1115_v25, %v2184_v60 }
 0x427   :  { %v1134_v33 = vcombine.high %v1132_v26, %v1132_v26  ;;  %v1167_v35 = vsel %vm499_vm8, %v1133_v27, -inf  ;;  %v1174_v36 = vsel %vm499_vm8, %v1132_v26, -inf  ;;  %v1149_v31 = vrot.slane %v1135_v29, %v2184_v60 }
 0x428   :  { %v1162_v39 = vmax.f32 %v1160_v28, %v1161_v30  ;;  %v1168_v41 = vrot.slane %v1167_v35, 4  ;;  %v1175_v40 = vrot.slane %v1174_v36, 4  ;;  %v1150_v43 = vcombine.high %v1142_v32, %v1142_v32 }
 0x429   :  { %v1151_v45 = vcombine.high %v1149_v31, %v1149_v31  ;;  %v1188_v46 = vsel %vm499_vm8, %v1142_v32, -inf  ;;  %v1202_v47 = vsel %vm499_vm8, %v1149_v31, -inf  ;;  %v1181_v48 = vsel %vm499_vm8, %v1134_v33, -inf }
 0x42a   :  { %v1189_v18 = vrot.slane %v1188_v46, 4  ;;  %v1195_v49 = vsel %vm499_vm8, %v1150_v43, -inf  ;;  %v1203_v21 = vrot.slane %v1202_v47, 4  ;;  %v1163_v34 = vrot.slane %v1162_v39, 2 }
 0x42b   :  { %v1196_v38 = vrot.slane %v1195_v49, 4  ;;  %v1176_v37 = vmax.f32 %v1174_v36, %v1175_v40  ;;  %v1169_v44 = vmax.f32 %v1167_v35, %v1168_v41  ;;  %v1182_v60 = vrot.slane %v1181_v48, 4 }
 0x42c   :  { %v1190_v50 = vmax.f32 %v1188_v46, %v1189_v18  ;;  %v1164_v51 = vmax.f32 %v1162_v39, %v1163_v34  ;;  %v1204_v52 = vmax.f32 %v1202_v47, %v1203_v21  ;;  %v1209_v53 = vsel %vm499_vm8, %v1151_v45, -inf }
 0x42d   :  { %v1177_v56 = vrot.slane %v1176_v37, 2  ;;  %v1170_v3 = vrot.slane %v1169_v44, 2  ;;  %v1183_v22 = vmax.f32 %v1181_v48, %v1182_v60  ;;  %v1197_v57 = vmax.f32 %v1195_v49, %v1196_v38 }
 0x42e   :  { %v1165_v42 = vrot.slane %v1164_v51, 1  ;;  %v1191_v58 = vrot.slane %v1190_v50, 2  ;;  %v1210_v55 = vrot.slane %v1209_v53, 4  ;;  %v1205_v2 = vrot.slane %v1204_v52, 2 }
 0x42f   :  { %v1178_v59 = vmax.f32 %v1176_v37, %v1177_v56  ;;  %v1171_v61 = vmax.f32 %v1169_v44, %v1170_v3  ;;  %v1184_v62 = vrot.slane %v1183_v22, 2  ;;  %v1198_v63 = vrot.slane %v1197_v57, 2 }
 0x430   :  { %v1166_v0 = vmax.f32 %v1164_v51, %v1165_v42  ;;  %v1192_v1 = vmax.f32 %v1190_v50, %v1191_v58  ;;  %v1211_v5 = vmax.f32 %v1209_v53, %v1210_v55  ;;  %v1206_v15 = vmax.f32 %v1204_v52, %v1205_v2  ;;  %v1953_v42 = vld [vmem:[%s2580_s5 + $0x48] sm:$0xff]   ;;  %v1955_v55 = vld [vmem:[%s2580_s5 + $0x50] sm:$0xff]  }
 0x431   :  { %v1179_v6 = vrot.slane %v1178_v59, 1  ;;  %v1172_v7 = vrot.slane %v1171_v61, 1  ;;  %v1185_v8 = vmax.f32 %v1183_v22, %v1184_v62  ;;  %v1199_v11 = vmax.f32 %v1197_v57, %v1198_v63  ;;  %v1951_v22 = vld [vmem:[%s2580_s5 + $0x40] sm:$0xff]   ;;  %v1954_v58 = vld [vmem:[%s2580_s5 + $0x8] sm:$0xff]   ;;  %v1958_v62 = vld [vmem:[%s2580_s5 + $0x18] sm:$0xff]  }
 0x432   :  { %1224 = vrot.lane.b32.xlu0 %v1166_v0, %s2021_s17  ;;  %v1212_v12 = vrot.slane %v1211_v5, 2  ;;  %v1193_v14 = vrot.slane %v1192_v1, 1  ;;  %v1207_v23 = vrot.slane %v1206_v15, 1  ;;  %v1952_v57 = vld [vmem:[%s2580_s5] sm:$0xff]   ;;  %1759 = vmatprep.subr.bf16.mxu0 %v1951_v22  ;;  %v1962_v2 = vld [vmem:[%s2580_s5 + $0x28] sm:$0xff]   ;;  %vm1337_vm8 = vcmask 523264  }
 0x433   :  { %v1180_v9 = vmax.f32 %v1178_v59, %v1179_v6  ;;  %v1186_v10 = vrot.slane %v1185_v8, 1  ;;  %v1173_v13 = vmax.f32 %v1171_v61, %v1172_v7  ;;  %v1200_v17 = vrot.slane %v1199_v11, 1  ;;  %1760 = vmatpush3.bf16.msra.mxu0 %v1952_v57  ;;  %v1956_v59 = vld [vmem:[%s2580_s5 + $0x10] sm:$0xff]   ;;  %v1957_v61 = vld [vmem:[%s2580_s5 + $0x58] sm:$0xff]   ;;  %v1959_v63 = vld [vmem:[%s2580_s5 + $0x60] sm:$0xff]  }
 0x434   :  { %v1213_v19 = vmax.f32 %v1211_v5, %v1212_v12  ;;  %v1194_v20 = vmax.f32 %v1192_v1, %v1193_v14  ;;  %v1208_v26 = vmax.f32 %v1206_v15, %v1207_v23  ;;  %1761 = vmatprep.subr.bf16.mxu0 %v1953_v42  ;;  %v1961_v1 = vld [vmem:[%s2580_s5 + $0x68] sm:$0xff]   ;;  %v1963_v5 = vld [vmem:[%s2580_s5 + $0x70] sm:$0xff]   ;;  %v1317_v12 = vsub.s32 2, %v2181_v54  ;;  %v1965_v14 = vld [vmem:[%s2580_s5 + $0x78] sm:$0xff]  }
 0x435   :  { %1228 = vrot.lane.b32.xlu1 %v1180_v9, %s2021_s17  ;;  %v1187_v16 = vmax.f32 %v1185_v8, %v1186_v10  ;;  %v1201_v24 = vmax.f32 %v1199_v11, %v1200_v17  ;;  %v1964_v6 = vld [vmem:[%s2580_s5 + $0x30] sm:$0xff]   ;;  %v1295_v10 = vsub.s32 0, %v2181_v54  ;;  %v1305_v11 = vsub.s32 1, %v2181_v54  ;;  %v1966_v15 = vld [vmem:[%s2580_s5 + $0x38] sm:$0xff]  }
 0x436   :  { %1226 = vrot.lane.b32.xlu0 %v1173_v13, %s2021_s17  ;;  %v1214_v25 = vrot.slane %v1213_v19, 1 }
 0x437   :  { %1762 = vmatpush3.bf16.msra.mxu0 %v1954_v58 }
 0x438   :  { %v1215_v27 = vmax.f32 %v1213_v19, %v1214_v25  ;;  %1763 = vmatprep.subr.bf16.mxu0 %v1955_v55 }
 0x439   :  { %1230 = vrot.lane.b32.xlu1 %v1187_v16, %s2021_s17 }
 0x43a   :  { %1232 = vrot.lane.b32.xlu0 %v1194_v20, %s2021_s17 }
 0x43b   :  { %1764 = vmatpush3.bf16.msra.mxu0 %v1956_v59 }
 0x43c   :  { %1765 = vmatprep.subr.bf16.mxu0 %v1957_v61 }
 0x43d   :  { %1234 = vrot.lane.b32.xlu1 %v1201_v24, %s2021_s17 }
 0x43e   :  { %1236 = vrot.lane.b32.xlu0 %v1208_v26, %s2021_s17 }
 0x43f   :  { %1766 = vmatpush3.bf16.msra.mxu0 %v1958_v62 }
 0x440   :  { %1767 = vmatprep.subr.bf16.mxu0 %v1959_v63 }
 0x441   :  { %1238 = vrot.lane.b32.xlu1 %v1215_v27, %s2021_s17 }
 0x4a4   :  { %v1225_v28 = vpop.permute.xlu0 %1224 }
 0x4a5   :  { %v1248_v35 = vmax.f32 %v1166_v0, %v1225_v28  ;;  %v1960_v0 = vld [vmem:[%s2580_s5 + $0x20] sm:$0xff]   ;;  %s2029_s5 = smov 64  }
 0x4a6   :  { %1768 = vmatpush3.bf16.msra.mxu0 %v1960_v0 }
 0x4a7   :  { %v1229_v29 = vpop.permute.xlu1 %1228  ;;  %1769 = vmatprep.subr.bf16.mxu0 %v1961_v1 }
 0x4a8   :  { %v1250_v30 = vmax.f32 %v1180_v9, %v1229_v29  ;;  %v1227_v32 = vpop.permute.xlu0 %1226 }
 0x4a9   :  { %v1249_v33 = vmax.f32 %v1173_v13, %v1227_v32  ;;  %v1327_v13 = vsub.s32 3, %v2181_v54 }
 0x4aa   :  { %v1266_v39 = vrot.slane %v1250_v30, 6  ;;  %1770 = vmatpush3.bf16.msra.mxu0 %v1962_v2 }
 0x4ab   :  { %v1264_v36 = vrot.slane %v1249_v33, 7  ;;  %v1231_v31 = vpop.permute.xlu1 %1230  ;;  %1771 = vmatprep.subr.bf16.mxu0 %v1963_v5 }
 0x4ac   :  { %v1251_v41 = vmax.f32 %v1187_v16, %v1231_v31  ;;  %v1233_v40 = vpop.permute.xlu0 %1232 }
 0x4ad   :  { %v1265_v43 = vsel %vm709_vm9, %v1264_v36, %v1248_v35  ;;  %v1252_v45 = vmax.f32 %v1194_v20, %v1233_v40 }
 0x4ae   :  { %v1267_v46 = vsel %vm712_vm10, %v1266_v39, %v1265_v43  ;;  %v1268_v47 = vrot.slane %v1251_v41, 5  ;;  %1772 = vmatpush3.bf16.msra.mxu0 %v1964_v6 }
 0x4af   :  { %v1270_v48 = vrot.slane %v1252_v45, 4  ;;  %v1235_v18 = vpop.permute.xlu1 %1234  ;;  %1773 = vmatprep.subr.bf16.mxu0 %v1965_v14 }
 0x4b0   :  { %v1269_v49 = vsel %vm715_vm11, %v1268_v47, %v1267_v46  ;;  %v1253_v21 = vmax.f32 %v1201_v24, %v1235_v18  ;;  %v1237_v34 = vpop.permute.xlu0 %1236  ;;  %v1967_v47 = vld [vmem:[%s2582_s7] sm:$0xff]  }
 0x4b1   :  { %v1271_v38 = vsel %vm718_vm12, %v1270_v48, %v1269_v49  ;;  %v1254_v37 = vmax.f32 %v1208_v26, %v1237_v34  ;;  %v1968_v48 = vld [vmem:[%s2582_s7 + $0x8] sm:$0xff]   ;;  %v1699_v49 = vld [vmem:[%s2581_s6] ss:$0 sm:$0xff] }
 0x4b2   :  { %v1272_v44 = vrot.slane %v1253_v21, 3  ;;  %1774 = vmatpush3.bf16.msra.mxu0 %v1966_v15 }
 0x4b3   :  { %v1274_v60 = vrot.slane %v1254_v37, 2  ;;  %v1239_v50 = vpop.permute.xlu1 %1238  ;;  %1868 = vmatprep.subr.bf16.mxu0 %v2018_v4 }
 0x4b4   :  { %v1273_v51 = vsel %vm721_vm13, %v1272_v44, %v1271_v38  ;;  %v1255_v52 = vmax.f32 %v1215_v27, %v1239_v50 }
 0x4b5   :  { %v1275_v53 = vsel %vm724_vm14, %v1274_v60, %v1273_v51 }
 0x4b6   :  { %v1276_v56 = vrot.slane %v1255_v52, 1 }
 0x4b8   :  { %v1277_v3 = vsel %vm727_vm15, %v1276_v56, %v1275_v53 }
 0x4b9   :  { %1282 = vrot.lane.b32.xlu1 %v1277_v3, %s2023_s19  ;;  %1279 = vrot.lane.b32.xlu0 %v1277_v3, %s2021_s17  ;;  %s2030_s19 = smov [#allocation4]  }
 0x4ba   :  { %s1596_s30 = sshll.u32 %s2030_s19, 4  ;;  %s1597_s30 = int_to_ptr.vmem [resolvable:$true] %s1596_s30 }
 0x4bb   :  { %s1969_s7 = scalar_lea.vmem %s1597_s30, 32  ;;  %p1974_p1 = scmp.lt.s32.totalorder %s1597_s30, %s1597_s30 }
 0x4bc   :  { %p1970_p0 = scmp.ne.s32.totalorder %s1597_s30, %s1969_s7  ;;  %p1975_p2 = scmp.lt.s32.totalorder %s1969_s7, %s1969_s7 }
 0x4bd   :  { %1285 = vrot.lane.b32.xlu0 %v1277_v3, %s2025_s27 }
 0x4be   :  { %p1976_p3 = por %p1975_p2, %p1974_p1 }
 0x4c0   :  { %p1977_p4 = pnand %p1976_p3, %p1970_p0 }
 0x52b   :  { %v1280_v7 = vpop.permute.xlu0 %1279  ;;  %v1283_v8 = vpop.permute.xlu1 %1282 }
 0x52c   :  { %v1288_v9 = vsel %vm790_vm6, %v1277_v3, %v1280_v7 }
 0x52d   :  { %v1289_v16 = vsel %vm796_vm0, %v1288_v9, %v1283_v8 }
 0x52f   :  { %v1286_v17 = vpop.permute.xlu0 %1285 }
 0x530   :  { %v1290_v19 = vsel %vm802_vm2, %v1289_v16, %v1286_v17 }
 0x531   :  { %v1292_v20 = vcombine.high %v1290_v19, %v1290_v19  ;;  %v1296_v23 = vrot.slane %v1290_v19, %v1295_v10  ;;  %v1306_v24 = vrot.slane %v1290_v19, %v1305_v11  ;;  %v1318_v25 = vrot.slane %v1290_v19, %v1317_v12 }
 0x532   :  { %v1328_v54 = vrot.slane %v1290_v19, %v1327_v13 }
 0x533   :  { %v1310_v26 = vrot.slane %v1292_v20, %v1305_v11  ;;  %v1332_v27 = vrot.slane %v1292_v20, %v1327_v13  ;;  %v1300_v28 = vrot.slane %v1292_v20, %v1295_v10  ;;  %v1322_v29 = vrot.slane %v1292_v20, %v1317_v12 }
 0x535   :  { %v1311_v30 = vsel %vm709_vm9, %v1310_v26, %v1306_v24  ;;  %v1333_v32 = vsel %vm709_vm9, %v1332_v27, %v1328_v54  ;;  %v1301_v33 = vsel %vm709_vm9, %v1300_v28, %v1296_v23  ;;  %v1323_v35 = vsel %vm709_vm9, %v1322_v29, %v1318_v25 }
 0x536   :  { %v1916_v36 = vpack.i.bf16 %v1311_v30, %v1333_v32  ;;  %vm1517_vm9 = vcmask 254976  }
 0x538   :  { %1917 = vrot.lane.b32.xlu1 %v1916_v36, %s2029_s5 }
 0x5aa   :  { %v1918_v31 = vpop.permute.xlu1 %1917 }
 0x5ab   :  { %v1920_v39 = vunpack.i.h.bf16 %v1918_v31  ;;  %v1919_v41 = vunpack.i.l.bf16 %v1918_v31 }
 0x5ad   :  { %v1338_v40 = vsel %vm1337_vm8, %v1301_v33, %v1920_v39  ;;  %v1339_v43 = vsel %vm1337_vm8, %v1323_v35, %v1919_v41 }
 0x5ae   :  { %v1340_v45 = vpack.c.bf16 %v1338_v40, %v1338_v40  ;;  %v1341_v46 = vpack.c.bf16 %v1339_v43, %v1339_v43 }
 0x5b0   :  { %1509 = vmatprep.mubr.bf16.mxu0 %v1341_v46 }
 0x5b1   :  { %1510 = vmatmul.mubr.bf16.vlgmr.msra.gmra.mrb[4].mxu0 %v1340_v45 }
 0x5b2   :  { %1872 = vmatprep.mubr.msk.bf16.mxu0 %vm2027_vm5, %v2018_v4  ;;  %1869 = vmatpush3.bf16.msra.mxu0 %v1967_v47 }
 0x5b3   :  { %1870 = vmatprep.subr.bf16.mxu0 %v2018_v4 }
 0x5b6   :  { %1871 = vmatpush3.bf16.msra.mxu0 %v1968_v48 }
 0x684   :  { %v1775_v18 = vpop.f32.mrb[4].mxu0 }
 0x685   :  { %v1776_v21 = vpop.f32.mrb[5].mxu0 }
 0x686   :  { %v1777_v34 = vadd.f32 %v1776_v21, %v1775_v18  ;;  %v1778_v38 = vpop.f32.mrb[6].mxu0 }
 0x687   :  { %v1779_v37 = vpop.f32.mrb[7].mxu0 }
 0x688   :  { %v1512_v44 = vadd.f32 %v1777_v34, %v1699_v49 }
 0x68a   :  { %v1519_v60 = vpack.c.bf16 %v1512_v44, %v1512_v44  ;;  %1518 = vst.msk [vmem:[#allocation4] sm:$0x3] %vm1517_vm9, %v1512_v44 }
 0x68c   :  { %1873 = vmatmul.mubr.msk.bf16.vlgmr.msra.gmra.mrb[8].mxu0 %vm796_vm0, %v1519_v60 }
 0x68d   :  { %1980 = shalt.err (!%p1977_p4)
}
 0x68e   :  { %s1981_s13 = scalar_lea.hbm %s2585_s10, 32 }
 0x68f   :  { %p1982_p5 = scmp.ne.s32.totalorder %s2585_s10, %s1981_s13  ;;  %p1985_p6 = scmp.lt.u32.totalorder %s1981_s13, %s2585_s10 }
 0x691   :  { %p1987_p7 = pnand %p1985_p6, %p1982_p5 }
 0x693   :  { %1990 = shalt.err (!%p1987_p7)
}
 0x694   :  { %1599 = dma.vmem_to_hbm [thread:$0]  %s1597_s30, 32, %s2585_s10, [#allocation5]   ;;  %v1716_v4 = vld [vmem:[%s2583_s8] ss:$0 sm:$0xff]  ;;  %vm1586_vm10 = vcmask 74752  }
 0x695   :  { %s2031_s4 = smov [#allocation6]  }
 0x696   :  { %s1606_s9 = sshll.u32 %s2031_s4, 4  ;;  %s1607_s9 = int_to_ptr.vmem [resolvable:$true] %s1606_s9 }
 0x697   :  { %s1991_s20 = scalar_lea.vmem %s1607_s9, 32  ;;  %p1996_p9 = scmp.lt.s32.totalorder %s1607_s9, %s1607_s9 }
 0x698   :  { %p1992_p8 = scmp.ne.s32.totalorder %s1607_s9, %s1991_s20  ;;  %p1997_p10 = scmp.lt.s32.totalorder %s1991_s20, %s1991_s20 }
 0x69a   :  { %p1998_p11 = por %p1997_p10, %p1996_p9 }
 0x69c   :  { %p1999_p12 = pnand %p1998_p11, %p1992_p8 }
 0x75f   :  { %v1580_v50 = vpop.f32.mrb[8].mxu0 }
 0x760   :  { %v1581_v51 = vadd.f32 %v1716_v4, %v1580_v50  ;;  %v1874_v52 = vpop.f32.mrb[9].mxu0 }
 0x761   :  { %v1583_v53 = vpop.f32.mrb[10].mxu0 }
 0x762   :  { %v1875_v56 = vpop.f32.mrb[11].mxu0  ;;  %1587 = vst.msk [vmem:[#allocation6] sm:$0x3] %vm1586_vm10, %v1581_v51 }
 0x763   :  { %2002 = shalt.err (!%p1999_p12)
}
 0x764   :  { %s2003_s8 = scalar_lea.hbm %s2586_s11, 32 }
 0x765   :  { %p2004_p13 = scmp.ne.s32.totalorder %s2586_s11, %s2003_s8  ;;  %p2007_p0 = scmp.lt.u32.totalorder %s2003_s8, %s2586_s11 }
 0x767   :  { %p2009_p1 = pnand %p2007_p0, %p2004_p13 }
 0x769   :  { %2012 = shalt.err (!%p2009_p1)
}
 0x76a   :  { %1609 = dma.vmem_to_hbm [thread:$0]  %s1607_s9, 32, %s2586_s11, [#allocation7]  }
 0x76b   :  { %2013 = dma.done.wait [#allocation5], 32  }
 0x76c   :  { %2014 = vsyncadd [#allocation5], 4294967264 }
 0x76d   :  { %2015 = dma.done.wait [#allocation7], 32  }
 0x76e   :  { %2016 = vsyncadd [#allocation7], 4294967264 }
 0x76f   :  { %1618 = vsyncpa [#allocation5], 1 }
 0x770   :  { %1619 = vsyncpa [#allocation7], 1 }

</bundles_post_ra>
